<compile_context>
chip_gen: v7x
topology: tpu7x:2x2x1
jax: 0.10.0
libtpu: 0.0.40
codegen_flags: <defaults>
</compile_context>

<pallas_src>
import functools

import jax
import jax.numpy as jnp
from jax.experimental import pallas as pl
from jax.experimental.pallas import tpu as pltpu


# ----------------------------------------------------------------------------
# the kernel: one grid step == whole dialogue (time recurrence as fori_loop)
# ----------------------------------------------------------------------------
def _dialogue_rnn_kernel(
    u_ref, qm_ref, oh_ref,
    gwu_ref, gwq_ref, gwhh_ref, gbih_ref, gbhh_ref,
    pwu_ref, pwc_ref, pwhh_ref, pbih_ref, pbhh_ref,
    ewih_ref, ewhh_ref, ebih_ref, ebhh_ref,
    aw_ref,
    e_out_ref, alpha_out_ref,
    scores_sc,
    *, D_g, D_p, D_e):
    f32 = jnp.float32
    S, B, _ = u_ref.shape
    P = qm_ref.shape[2]

    # hoist (loop-invariant) weights out of the time loop
    gwu = gwu_ref[...]; gwq = gwq_ref[...]; gwhh = gwhh_ref[...]
    gbih = gbih_ref[...]; gbhh = gbhh_ref[...]
    pwu = pwu_ref[...]; pwc = pwc_ref[...]; pwhh = pwhh_ref[...]
    pbih = pbih_ref[...]; pbhh = pbhh_ref[...]
    ewih = ewih_ref[...]; ewhh = ewhh_ref[...]
    ebih = ebih_ref[...]; ebhh = ebhh_ref[...]
    aw = aw_ref[...]                          # (D_g, 1)

    def gru_gates(gi, gh, h, H):
        # PyTorch GRUCell gate order (r, z, n); gi/gh already include biases.
        r = jax.nn.sigmoid(gi[..., 0 * H:1 * H] + gh[..., 0 * H:1 * H])
        z = jax.nn.sigmoid(gi[..., 1 * H:2 * H] + gh[..., 1 * H:2 * H])
        n = jnp.tanh(gi[..., 2 * H:3 * H] + r * gh[..., 2 * H:3 * H])
        return (1.0 - z) * n + z * h

    def step(t, carry):
        g_prev, q, e_prev, m_run, l_run, acc = carry
        u = u_ref[t]                          # (B, D_m)
        qm = qm_ref[t]                        # (B, P)  float mask
        oh = oh_ref[t]                        # (B, P)  one-hot speaker selector

        # ----- global GRU (split-weight matmuls, no concatenate) -----
        q0_sel = jnp.sum(q * oh[:, :, None], axis=1)                  # (B, D_p)
        gi_g = (jnp.dot(u, gwu, preferred_element_type=f32)
                + jnp.dot(q0_sel, gwq, preferred_element_type=f32) + gbih)
        gh_g = jnp.dot(g_prev, gwhh, preferred_element_type=f32) + gbhh
        g_ = gru_gates(gi_g, gh_g, g_prev, D_g)                       # (B, D_g)

        # ----- incremental SimpleAttention: context from online softmax -----
        inv_l = jnp.where(l_run > 0.0, 1.0 / l_run, 0.0)
        c_ = acc * inv_l                                              # (B, D_g), zeros at t==0

        score = jnp.dot(g_, aw, preferred_element_type=f32)           # (B, 1)
        scores_sc[t] = score                                          # keep raw scores for alpha
        m_new = jnp.maximum(m_run, score)
        corr = jnp.exp(m_run - m_new)
        p_t = jnp.exp(score - m_new)
        l_new = l_run * corr + p_t
        acc_new = acc * corr + p_t * g_

        # ----- party GRU: one stacked matmul over all parties -----
        gi_p = (jnp.dot(u, pwu, preferred_element_type=f32)
                + jnp.dot(c_, pwc, preferred_element_type=f32) + pbih)   # (B, 3*D_p)
        gh_p = jnp.dot(q.reshape(B * P, D_p), pwhh,
                       preferred_element_type=f32) + pbhh                # (B*P, 3*D_p)
        gh_p = gh_p.reshape(B, P, 3 * D_p)
        qs = gru_gates(gi_p[:, None, :], gh_p, q, D_p)                   # (B, P, D_p)
        qm3 = qm[:, :, None]
        q_new = q * (1.0 - qm3) + qs * qm3            # listener_state=False: ql_ = q0

        # ----- emotion GRU -----
        q_sel = jnp.sum(q_new * oh[:, :, None], axis=1)               # (B, D_p)
        gi_e = jnp.dot(q_sel, ewih, preferred_element_type=f32) + ebih
        gh_e = jnp.dot(e_prev, ewhh, preferred_element_type=f32) + ebhh
        e_ = gru_gates(gi_e, gh_e, e_prev, D_e)                       # (B, D_e)

        e_out_ref[t] = e_                 # output block is VMEM-resident; one HBM DMA at end
        return (g_, q_new, e_, m_new, l_new, acc_new)

    init = (jnp.zeros((B, D_g), f32),          # g_prev
            jnp.zeros((B, P, D_p), f32),       # q
            jnp.zeros((B, D_e), f32),          # e_prev
            jnp.full((B, 1), -1e30, f32),      # online-softmax running max
            jnp.zeros((B, 1), f32),            # online-softmax running sum
            jnp.zeros((B, D_g), f32))          # online-softmax weighted acc
    jax.lax.fori_loop(0, S, step, init)

    # ----- all alphas from the (S,B) scores, one dense masked softmax + store -----
    scores_bs = scores_sc[:, :, 0].T                                  # (B, S)
    t_idx = jax.lax.broadcasted_iota(jnp.int32, (S, B, S), 0)
    s_idx = jax.lax.broadcasted_iota(jnp.int32, (S, B, S), 2)
    valid = s_idx < t_idx
    logits = jnp.where(valid, scores_bs[None, :, :], -1e30)
    mx = jnp.max(logits, axis=2, keepdims=True)
    pexp = jnp.where(valid, jnp.exp(logits - mx), 0.0)
    ssum = jnp.sum(pexp, axis=2, keepdims=True)
    inv = jnp.where(ssum > 0.0, 1.0 / ssum, 0.0)                      # row t==0 -> all zeros
    alpha_out_ref[...] = pexp * inv


# ----------------------------------------------------------------------------
# wrapper
# ----------------------------------------------------------------------------
def dialogue_rnn(U, qmask, params, D_g, D_p, D_e, *, num_batch_blocks=1):
    S, B, D_m = U.shape
    P = qmask.shape[2]
    f32 = jnp.float32

    # speaker selection precomputed outside the kernel (argmax -> one-hot)
    onehot = jax.nn.one_hot(jnp.argmax(qmask, axis=-1), P, dtype=f32)

    # pre-transpose and pre-split GRU weights so no in-kernel concatenate is needed
    g_wih_t = params['g_wih'].T            # (D_m + D_p, 3*D_g)
    p_wih_t = params['p_wih'].T            # (D_m + D_g, 3*D_p)
    weights = [
        g_wih_t[:D_m], g_wih_t[D_m:], params['g_whh'].T,
        params['g_bih'][None, :], params['g_bhh'][None, :],
        p_wih_t[:D_m], p_wih_t[D_m:], params['p_whh'].T,
        params['p_bih'][None, :], params['p_bhh'][None, :],
        params['e_wih'].T, params['e_whh'].T,
        params['e_bih'][None, :], params['e_bhh'][None, :],
        params['attn_w'].T,                # (D_g, 1)
    ]

    # optional batch sharding (v7x: set num_batch_blocks=2 with B a multiple of 16
    # so each (S, Bb, ·) block keeps its second-to-last dim a multiple of 8).
    nb = num_batch_blocks
    assert B % nb == 0, "batch must divide evenly into batch blocks"
    Bb = B // nb

    def batch_spec(trail):
        return pl.BlockSpec((S, Bb, trail), lambda i: (0, i, 0))

    def full_spec(arr):
        nd = arr.ndim
        return pl.BlockSpec(arr.shape, lambda i, _nd=nd: (0,) * _nd)

    kernel = functools.partial(_dialogue_rnn_kernel, D_g=D_g, D_p=D_p, D_e=D_e)

    e, alpha_pad = pl.pallas_call(
        kernel,
        out_shape=(jax.ShapeDtypeStruct((S, B, D_e), f32),
                   jax.ShapeDtypeStruct((S, B, S), f32)),
        grid_spec=pltpu.PrefetchScalarGridSpec(
            num_scalar_prefetch=0,
            grid=(nb,),
            in_specs=[batch_spec(D_m), batch_spec(P), batch_spec(P)]
                     + [full_spec(w) for w in weights],
            out_specs=[batch_spec(D_e), batch_spec(S)],
            scratch_shapes=[pltpu.VMEM((S, Bb, 1), f32)]),   # per-step attention scores
        compiler_params=pltpu.CompilerParams(
            dimension_semantics=("parallel",)),              # batch blocks are independent
    )(U, qmask, onehot, *weights)
    return e, alpha_pad


# ----------------------------------------------------------------------------
# deterministic parameter init (PyTorch-style uniform, shapes from __init__)
# ----------------------------------------------------------------------------
def make_params(key, D_m, D_g, D_p, D_e):
    ks = jax.random.split(key, 13)

    def uni(k, shape, hidden):
        b = 1.0 / (hidden ** 0.5)
        return jax.random.uniform(k, shape, jnp.float32, -b, b)

    return {
        # g_cell: GRUCell(D_m + D_p, D_g)
        'g_wih': uni(ks[0], (3 * D_g, D_m + D_p), D_g),
        'g_whh': uni(ks[1], (3 * D_g, D_g), D_g),
        'g_bih': uni(ks[2], (3 * D_g,), D_g),
        'g_bhh': uni(ks[3], (3 * D_g,), D_g),
        # p_cell: GRUCell(D_m + D_g, D_p)
        'p_wih': uni(ks[4], (3 * D_p, D_m + D_g), D_p),
        'p_whh': uni(ks[5], (3 * D_p, D_p), D_p),
        'p_bih': uni(ks[6], (3 * D_p,), D_p),
        'p_bhh': uni(ks[7], (3 * D_p,), D_p),
        # e_cell: GRUCell(D_p, D_e)
        'e_wih': uni(ks[8], (3 * D_e, D_p), D_e),
        'e_whh': uni(ks[9], (3 * D_e, D_e), D_e),
        'e_bih': uni(ks[10], (3 * D_e,), D_e),
        'e_bhh': uni(ks[11], (3 * D_e,), D_e),
        # SimpleAttention.scalar: Linear(D_g, 1, bias=False)
        'attn_w': uni(ks[12], (1, D_g), D_g),
    }


# ----------------------------------------------------------------------------
# pure-JAX reference (mirrors the PyTorch loop, eval mode)
# ----------------------------------------------------------------------------
def reference(U, qmask, params, D_g, D_p, D_e):
    S, B, D_m = U.shape
    P = qmask.shape[2]

    def gru(x, h, w_ih, w_hh, b_ih, b_hh):
        H = h.shape[1]
        gi = x @ w_ih.T + b_ih
        gh = h @ w_hh.T + b_hh
        r = jax.nn.sigmoid(gi[:, :H] + gh[:, :H])
        z = jax.nn.sigmoid(gi[:, H:2 * H] + gh[:, H:2 * H])
        n = jnp.tanh(gi[:, 2 * H:] + r * gh[:, 2 * H:])
        return (1 - z) * n + z * h

    g_hist, es, alphas = [], [], []
    q = jnp.zeros((B, P, D_p), jnp.float32)
    e_prev = jnp.zeros((B, D_e), jnp.float32)
    for t in range(S):
        u, qm = U[t], qmask[t]
        onehot = jax.nn.one_hot(jnp.argmax(qm, axis=1), P, dtype=jnp.float32)
        q0_sel = jnp.sum(q * onehot[:, :, None], axis=1)
        g_prev = g_hist[-1] if g_hist else jnp.zeros((B, D_g), jnp.float32)
        g_ = gru(jnp.concatenate([u, q0_sel], 1), g_prev,
                 params['g_wih'], params['g_whh'], params['g_bih'], params['g_bhh'])
        if not g_hist:
            c_ = jnp.zeros((B, D_g), jnp.float32)
            alpha = jnp.zeros((B, 0), jnp.float32)
        else:
            M = jnp.stack(g_hist, 0)
            scale = jnp.einsum('tbd,d->tb', M, params['attn_w'][0])
            a = jax.nn.softmax(scale, axis=0)
            c_ = jnp.einsum('tb,tbd->bd', a, M)
            alpha = a.T
        g_hist.append(g_)
        u_c = jnp.concatenate([u, c_], 1)
        x_p = jnp.broadcast_to(u_c[:, None, :], (B, P, D_m + D_g)).reshape(B * P, -1)
        qs = gru(x_p, q.reshape(B * P, D_p),
                 params['p_wih'], params['p_whh'],
                 params['p_bih'], params['p_bhh']).reshape(B, P, D_p)
        q = q * (1 - qm[:, :, None]) + qs * qm[:, :, None]
        q_sel = jnp.sum(q * onehot[:, :, None], axis=1)
        e_ = gru(q_sel, e_prev,
                 params['e_wih'], params['e_whh'], params['e_bih'], params['e_bhh'])
        e_prev = e_
        es.append(e_)
        alphas.append(alpha)
    return jnp.stack(es, 0), alphas


if __name__ == "__main__":
    S, B, P = 8, 2, 2
    D_m, D_g, D_p, D_e = 32, 32, 32, 32

    key = jax.random.PRNGKey(0)
    k1, k2, k3 = jax.random.split(key, 3)
    U = jax.random.normal(k1, (S, B, D_m), jnp.float32)
    speakers = jax.random.randint(k2, (S, B), 0, P)
    qmask = jax.nn.one_hot(speakers, P, dtype=jnp.float32)
    params = make_params(k3, D_m, D_g, D_p, D_e)

    e, alpha_pad = dialogue_rnn(U, qmask, params, D_g, D_p, D_e)
    e = jax.block_until_ready(e)
    alpha_pad = jax.block_until_ready(alpha_pad)

    # correctness check against the pure-JAX reference
    e_ref, alphas_ref = reference(U, qmask, params, D_g, D_p, D_e)
    alpha_ref_pad = jnp.zeros((S, B, S), jnp.float32)
    for t in range(1, S):
        alpha_ref_pad = alpha_ref_pad.at[t, :, :t].set(alphas_ref[t])

    assert e.shape == (S, B, D_e)
    assert jnp.allclose(e, e_ref, atol=1e-4, rtol=1e-4), "emotion states mismatch"
    assert jnp.allclose(alpha_pad, alpha_ref_pad, atol=1e-4, rtol=1e-4), "alpha mismatch"

    # TODO(synk): nn.Dropout is implemented as identity (eval mode); training-mode
    # stochastic dropout has no deterministic equivalent here.
    print("KERNEL_OK")
</pallas_src>

<mosaic_0001>
module attributes {stable_mosaic.version = 11 : i64} {
  func.func @_dialogue_rnn_kernel(%arg0: i32, %arg1: memref<8x2x32xf32, #tpu.memory_space<vmem>>, %arg2: memref<8x2x2xf32, #tpu.memory_space<vmem>>, %arg3: memref<8x2x2xf32, #tpu.memory_space<vmem>>, %arg4: memref<32x96xf32, #tpu.memory_space<vmem>>, %arg5: memref<32x96xf32, #tpu.memory_space<vmem>>, %arg6: memref<32x96xf32, #tpu.memory_space<vmem>>, %arg7: memref<1x96xf32, #tpu.memory_space<vmem>>, %arg8: memref<1x96xf32, #tpu.memory_space<vmem>>, %arg9: memref<32x96xf32, #tpu.memory_space<vmem>>, %arg10: memref<32x96xf32, #tpu.memory_space<vmem>>, %arg11: memref<32x96xf32, #tpu.memory_space<vmem>>, %arg12: memref<1x96xf32, #tpu.memory_space<vmem>>, %arg13: memref<1x96xf32, #tpu.memory_space<vmem>>, %arg14: memref<32x96xf32, #tpu.memory_space<vmem>>, %arg15: memref<32x96xf32, #tpu.memory_space<vmem>>, %arg16: memref<1x96xf32, #tpu.memory_space<vmem>>, %arg17: memref<1x96xf32, #tpu.memory_space<vmem>>, %arg18: memref<32x1xf32, #tpu.memory_space<vmem>>, %arg19: memref<8x2x32xf32, #tpu.memory_space<vmem>>, %arg20: memref<8x2x8xf32, #tpu.memory_space<vmem>>, %arg21: memref<8x2x1xf32, #tpu.memory_space<vmem>>) attributes {dimension_semantics = [#tpu.dimension_semantics<parallel>], iteration_bounds = array<i64: 1>, scalar_prefetch = 0 : i64, scratch_operands = 1 : i64, tpu.core_type = #tpu.core_type<tc>, window_params = [{transform_indices = @transform_0, window_bounds = array<i64: 8, 2, 32>}, {transform_indices = @transform_1, window_bounds = array<i64: 8, 2, 2>}, {transform_indices = @transform_2, window_bounds = array<i64: 8, 2, 2>}, {pipeline_mode = #tpu.pipeline_mode<synchronous>, transform_indices = @transform_3, window_bounds = array<i64: 32, 96>}, {pipeline_mode = #tpu.pipeline_mode<synchronous>, transform_indices = @transform_4, window_bounds = array<i64: 32, 96>}, {pipeline_mode = #tpu.pipeline_mode<synchronous>, transform_indices = @transform_5, window_bounds = array<i64: 32, 96>}, {pipeline_mode = #tpu.pipeline_mode<synchronous>, transform_indices = @transform_6, window_bounds = array<i64: 1, 96>}, {pipeline_mode = #tpu.pipeline_mode<synchronous>, transform_indices = @transform_7, window_bounds = array<i64: 1, 96>}, {pipeline_mode = #tpu.pipeline_mode<synchronous>, transform_indices = @transform_8, window_bounds = array<i64: 32, 96>}, {pipeline_mode = #tpu.pipeline_mode<synchronous>, transform_indices = @transform_9, window_bounds = array<i64: 32, 96>}, {pipeline_mode = #tpu.pipeline_mode<synchronous>, transform_indices = @transform_10, window_bounds = array<i64: 32, 96>}, {pipeline_mode = #tpu.pipeline_mode<synchronous>, transform_indices = @transform_11, window_bounds = array<i64: 1, 96>}, {pipeline_mode = #tpu.pipeline_mode<synchronous>, transform_indices = @transform_12, window_bounds = array<i64: 1, 96>}, {pipeline_mode = #tpu.pipeline_mode<synchronous>, transform_indices = @transform_13, window_bounds = array<i64: 32, 96>}, {pipeline_mode = #tpu.pipeline_mode<synchronous>, transform_indices = @transform_14, window_bounds = array<i64: 32, 96>}, {pipeline_mode = #tpu.pipeline_mode<synchronous>, transform_indices = @transform_15, window_bounds = array<i64: 1, 96>}, {pipeline_mode = #tpu.pipeline_mode<synchronous>, transform_indices = @transform_16, window_bounds = array<i64: 1, 96>}, {pipeline_mode = #tpu.pipeline_mode<synchronous>, transform_indices = @transform_17, window_bounds = array<i64: 32, 1>}, {transform_indices = @transform_18, window_bounds = array<i64: 8, 2, 32>}, {transform_indices = @transform_19, window_bounds = array<i64: 8, 2, 8>}]} {
    %c0 = arith.constant 0 : index
    %c0_0 = arith.constant 0 : index
    %0 = vector.load %arg4[%c0, %c0_0] : memref<32x96xf32, #tpu.memory_space<vmem>>, vector<32x96xf32>
    %c0_1 = arith.constant 0 : index
    %c0_2 = arith.constant 0 : index
    %1 = vector.load %arg5[%c0_1, %c0_2] : memref<32x96xf32, #tpu.memory_space<vmem>>, vector<32x96xf32>
    %c0_3 = arith.constant 0 : index
    %c0_4 = arith.constant 0 : index
    %2 = vector.load %arg6[%c0_3, %c0_4] : memref<32x96xf32, #tpu.memory_space<vmem>>, vector<32x96xf32>
    %c0_5 = arith.constant 0 : index
    %c0_6 = arith.constant 0 : index
    %3 = vector.load %arg7[%c0_5, %c0_6] : memref<1x96xf32, #tpu.memory_space<vmem>>, vector<1x96xf32>
    %c0_7 = arith.constant 0 : index
    %c0_8 = arith.constant 0 : index
    %4 = vector.load %arg8[%c0_7, %c0_8] : memref<1x96xf32, #tpu.memory_space<vmem>>, vector<1x96xf32>
    %c0_9 = arith.constant 0 : index
    %c0_10 = arith.constant 0 : index
    %5 = vector.load %arg9[%c0_9, %c0_10] : memref<32x96xf32, #tpu.memory_space<vmem>>, vector<32x96xf32>
    %c0_11 = arith.constant 0 : index
    %c0_12 = arith.constant 0 : index
    %6 = vector.load %arg10[%c0_11, %c0_12] : memref<32x96xf32, #tpu.memory_space<vmem>>, vector<32x96xf32>
    %c0_13 = arith.constant 0 : index
    %c0_14 = arith.constant 0 : index
    %7 = vector.load %arg11[%c0_13, %c0_14] : memref<32x96xf32, #tpu.memory_space<vmem>>, vector<32x96xf32>
    %c0_15 = arith.constant 0 : index
    %c0_16 = arith.constant 0 : index
    %8 = vector.load %arg12[%c0_15, %c0_16] : memref<1x96xf32, #tpu.memory_space<vmem>>, vector<1x96xf32>
    %c0_17 = arith.constant 0 : index
    %c0_18 = arith.constant 0 : index
    %9 = vector.load %arg13[%c0_17, %c0_18] : memref<1x96xf32, #tpu.memory_space<vmem>>, vector<1x96xf32>
    %c0_19 = arith.constant 0 : index
    %c0_20 = arith.constant 0 : index
    %10 = vector.load %arg14[%c0_19, %c0_20] : memref<32x96xf32, #tpu.memory_space<vmem>>, vector<32x96xf32>
    %c0_21 = arith.constant 0 : index
    %c0_22 = arith.constant 0 : index
    %11 = vector.load %arg15[%c0_21, %c0_22] : memref<32x96xf32, #tpu.memory_space<vmem>>, vector<32x96xf32>
    %c0_23 = arith.constant 0 : index
    %c0_24 = arith.constant 0 : index
    %12 = vector.load %arg16[%c0_23, %c0_24] : memref<1x96xf32, #tpu.memory_space<vmem>>, vector<1x96xf32>
    %c0_25 = arith.constant 0 : index
    %c0_26 = arith.constant 0 : index
    %13 = vector.load %arg17[%c0_25, %c0_26] : memref<1x96xf32, #tpu.memory_space<vmem>>, vector<1x96xf32>
    %c0_27 = arith.constant 0 : index
    %c0_28 = arith.constant 0 : index
    %14 = vector.load %arg18[%c0_27, %c0_28] : memref<32x1xf32, #tpu.memory_space<vmem>>, vector<32x1xf32>
    %cst = arith.constant 0.000000e+00 : f32
    %15 = vector.broadcast %cst : f32 to vector<2x32xf32>
    %cst_29 = arith.constant 0.000000e+00 : f32
    %16 = vector.broadcast %cst_29 : f32 to vector<2x2x32xf32>
    %cst_30 = arith.constant 0.000000e+00 : f32
    %17 = vector.broadcast %cst_30 : f32 to vector<2x32xf32>
    %cst_31 = arith.constant -1.000000e+30 : f32
    %18 = vector.broadcast %cst_31 : f32 to vector<2x1xf32>
    %cst_32 = arith.constant 0.000000e+00 : f32
    %19 = vector.broadcast %cst_32 : f32 to vector<2x1xf32>
    %cst_33 = arith.constant 0.000000e+00 : f32
    %20 = vector.broadcast %cst_33 : f32 to vector<2x32xf32>
    %c0_i32 = arith.constant 0 : i32
    %c8_i32 = arith.constant 8 : i32
    %21 = arith.addi %c0_i32, %c8_i32 : i32
    %c1_i32 = arith.constant 1 : i32
    %22:6 = scf.for %arg22 = %c0_i32 to %21 step %c1_i32 iter_args(%arg23 = %15, %arg24 = %16, %arg25 = %17, %arg26 = %18, %arg27 = %19, %arg28 = %20) -> (vector<2x32xf32>, vector<2x2x32xf32>, vector<2x32xf32>, vector<2x1xf32>, vector<2x1xf32>, vector<2x32xf32>)  : i32 {
      %52 = arith.index_cast %arg22 : i32 to index
      %c0_48 = arith.constant 0 : index
      %c0_49 = arith.constant 0 : index
      %53 = vector.load %arg1[%52, %c0_48, %c0_49] : memref<8x2x32xf32, #tpu.memory_space<vmem>>, vector<1x2x32xf32>
      %54 = vector.shape_cast %53 : vector<1x2x32xf32> to vector<2x32xf32>
      %55 = arith.index_cast %arg22 : i32 to index
      %c0_50 = arith.constant 0 : index
      %c0_51 = arith.constant 0 : index
      %56 = vector.load %arg2[%55, %c0_50, %c0_51] : memref<8x2x2xf32, #tpu.memory_space<vmem>>, vector<1x2x2xf32>
      %57 = vector.shape_cast %56 : vector<1x2x2xf32> to vector<2x2xf32>
      %58 = arith.index_cast %arg22 : i32 to index
      %c0_52 = arith.constant 0 : index
      %c0_53 = arith.constant 0 : index
      %59 = vector.load %arg3[%58, %c0_52, %c0_53] : memref<8x2x2xf32, #tpu.memory_space<vmem>>, vector<1x2x2xf32>
      %60 = vector.shape_cast %59 : vector<1x2x2xf32> to vector<2x2xf32>
      %61 = vector.shape_cast %60 : vector<2x2xf32> to vector<2x2x1xf32>
      %62 = vector.broadcast %61 : vector<2x2x1xf32> to vector<2x2x32xf32>
      %63 = arith.mulf %arg24, %62 : vector<2x2x32xf32>
      %cst_54 = arith.constant dense<0.000000e+00> : vector<2x32xf32>
      %64 = vector.multi_reduction <add>, %63, %cst_54 [1] : vector<2x2x32xf32> to vector<2x32xf32>
      %cst_55 = arith.constant dense<0.000000e+00> : vector<2x96xf32>
      %65 = tpu.matmul %54, %0, %cst_55 {dimension_numbers = #tpu.dot_dimension_numbers<[1], [0], [0], [1], [0, 0, 1, 1], [], []>} : vector<2x32xf32>, vector<32x96xf32>, vector<2x96xf32> -> vector<2x96xf32>
      %cst_56 = arith.constant dense<0.000000e+00> : vector<2x96xf32>
      %66 = tpu.matmul %64, %1, %cst_56 {dimension_numbers = #tpu.dot_dimension_numbers<[1], [0], [0], [1], [0, 0, 1, 1], [], []>} : vector<2x32xf32>, vector<32x96xf32>, vector<2x96xf32> -> vector<2x96xf32>
      %67 = arith.addf %65, %66 : vector<2x96xf32>
      %68 = vector.broadcast %3 : vector<1x96xf32> to vector<2x96xf32>
      %69 = arith.addf %67, %68 : vector<2x96xf32>
      %cst_57 = arith.constant dense<0.000000e+00> : vector<2x96xf32>
      %70 = tpu.matmul %arg23, %2, %cst_57 {dimension_numbers = #tpu.dot_dimension_numbers<[1], [0], [0], [1], [0, 0, 1, 1], [], []>} : vector<2x32xf32>, vector<32x96xf32>, vector<2x96xf32> -> vector<2x96xf32>
      %71 = vector.broadcast %4 : vector<1x96xf32> to vector<2x96xf32>
      %72 = arith.addf %70, %71 : vector<2x96xf32>
      %73 = vector.extract_strided_slice %69 {offsets = [0, 0], sizes = [2, 32], strides = [1, 1]} : vector<2x96xf32> to vector<2x32xf32>
      %74 = vector.extract_strided_slice %72 {offsets = [0, 0], sizes = [2, 32], strides = [1, 1]} : vector<2x96xf32> to vector<2x32xf32>
      %75 = arith.addf %73, %74 : vector<2x32xf32>
      %76 = arith.negf %75 : vector<2x32xf32>
      %77 = math.exp %76 : vector<2x32xf32>
      %cst_58 = arith.constant 1.000000e+00 : f32
      %78 = vector.broadcast %cst_58 : f32 to vector<2x32xf32>
      %79 = arith.addf %78, %77 : vector<2x32xf32>
      %80 = arith.divf %78, %79 : vector<2x32xf32>
      %81 = vector.extract_strided_slice %69 {offsets = [0, 32], sizes = [2, 32], strides = [1, 1]} : vector<2x96xf32> to vector<2x32xf32>
      %82 = vector.extract_strided_slice %72 {offsets = [0, 32], sizes = [2, 32], strides = [1, 1]} : vector<2x96xf32> to vector<2x32xf32>
      %83 = arith.addf %81, %82 : vector<2x32xf32>
      %84 = arith.negf %83 : vector<2x32xf32>
      %85 = math.exp %84 : vector<2x32xf32>
      %cst_59 = arith.constant 1.000000e+00 : f32
      %86 = vector.broadcast %cst_59 : f32 to vector<2x32xf32>
      %87 = arith.addf %86, %85 : vector<2x32xf32>
      %88 = arith.divf %86, %87 : vector<2x32xf32>
      %89 = vector.extract_strided_slice %69 {offsets = [0, 64], sizes = [2, 32], strides = [1, 1]} : vector<2x96xf32> to vector<2x32xf32>
      %90 = vector.extract_strided_slice %72 {offsets = [0, 64], sizes = [2, 32], strides = [1, 1]} : vector<2x96xf32> to vector<2x32xf32>
      %91 = arith.mulf %80, %90 : vector<2x32xf32>
      %92 = arith.addf %89, %91 : vector<2x32xf32>
      %93 = math.tanh %92 : vector<2x32xf32>
      %cst_60 = arith.constant 1.000000e+00 : f32
      %94 = vector.broadcast %cst_60 : f32 to vector<2x32xf32>
      %95 = arith.subf %94, %88 : vector<2x32xf32>
      %96 = arith.mulf %95, %93 : vector<2x32xf32>
      %97 = arith.mulf %88, %arg23 : vector<2x32xf32>
      %98 = arith.addf %96, %97 : vector<2x32xf32>
      %cst_61 = arith.constant 0.000000e+00 : f32
      %99 = vector.broadcast %cst_61 : f32 to vector<2x1xf32>
      %100 = arith.cmpf ogt, %arg27, %99 : vector<2x1xf32>
      %cst_62 = arith.constant 1.000000e+00 : f32
      %101 = vector.broadcast %cst_62 : f32 to vector<2x1xf32>
      %102 = arith.divf %101, %arg27 : vector<2x1xf32>
      %cst_63 = arith.constant 0.000000e+00 : f32
      %103 = vector.broadcast %cst_63 : f32 to vector<2x1xf32>
      %104 = arith.select %100, %102, %103 : vector<2x1xi1>, vector<2x1xf32>
      %105 = vector.broadcast %104 : vector<2x1xf32> to vector<2x32xf32>
      %106 = arith.mulf %arg28, %105 : vector<2x32xf32>
      %cst_64 = arith.constant dense<0.000000e+00> : vector<2x1xf32>
      %107 = tpu.matmul %98, %14, %cst_64 {dimension_numbers = #tpu.dot_dimension_numbers<[1], [0], [0], [1], [0, 0, 1, 1], [], []>} : vector<2x32xf32>, vector<32x1xf32>, vector<2x1xf32> -> vector<2x1xf32>
      %108 = arith.index_cast %arg22 : i32 to index
      %c0_65 = arith.constant 0 : index
      %c0_66 = arith.constant 0 : index
      %109 = vector.load %arg21[%108, %c0_65, %c0_66] : memref<8x2x1xf32, #tpu.memory_space<vmem>>, vector<1x2x1xf32>
      %110 = vector.shape_cast %109 : vector<1x2x1xf32> to vector<2x1xf32>
      %111 = vector.shape_cast %107 : vector<2x1xf32> to vector<1x2x1xf32>
      tpu.vector_store %arg21[%108, %c0_65, %c0_66], %111 {strides = array<i32>} : memref<8x2x1xf32, #tpu.memory_space<vmem>>, vector<1x2x1xf32>,
      %112 = arith.maximumf %arg26, %107 : vector<2x1xf32>
      %113 = arith.subf %arg26, %112 : vector<2x1xf32>
      %114 = math.exp %113 : vector<2x1xf32>
      %115 = arith.subf %107, %112 : vector<2x1xf32>
      %116 = math.exp %115 : vector<2x1xf32>
      %117 = arith.mulf %arg27, %114 : vector<2x1xf32>
      %118 = arith.addf %117, %116 : vector<2x1xf32>
      %119 = vector.broadcast %114 : vector<2x1xf32> to vector<2x32xf32>
      %120 = arith.mulf %arg28, %119 : vector<2x32xf32>
      %121 = vector.broadcast %116 : vector<2x1xf32> to vector<2x32xf32>
      %122 = arith.mulf %121, %98 : vector<2x32xf32>
      %123 = arith.addf %120, %122 : vector<2x32xf32>
      %cst_67 = arith.constant dense<0.000000e+00> : vector<2x96xf32>
      %124 = tpu.matmul %54, %5, %cst_67 {dimension_numbers = #tpu.dot_dimension_numbers<[1], [0], [0], [1], [0, 0, 1, 1], [], []>} : vector<2x32xf32>, vector<32x96xf32>, vector<2x96xf32> -> vector<2x96xf32>
      %cst_68 = arith.constant dense<0.000000e+00> : vector<2x96xf32>
      %125 = tpu.matmul %106, %6, %cst_68 {dimension_numbers = #tpu.dot_dimension_numbers<[1], [0], [0], [1], [0, 0, 1, 1], [], []>} : vector<2x32xf32>, vector<32x96xf32>, vector<2x96xf32> -> vector<2x96xf32>
      %126 = arith.addf %124, %125 : vector<2x96xf32>
      %127 = vector.broadcast %8 : vector<1x96xf32> to vector<2x96xf32>
      %128 = arith.addf %126, %127 : vector<2x96xf32>
      %129 = vector.shape_cast %arg24 : vector<2x2x32xf32> to vector<4x32xf32>
      %cst_69 = arith.constant dense<0.000000e+00> : vector<4x96xf32>
      %130 = tpu.matmul %129, %7, %cst_69 {dimension_numbers = #tpu.dot_dimension_numbers<[1], [0], [0], [1], [0, 0, 1, 1], [], []>} : vector<4x32xf32>, vector<32x96xf32>, vector<4x96xf32> -> vector<4x96xf32>
      %131 = vector.broadcast %9 : vector<1x96xf32> to vector<4x96xf32>
      %132 = arith.addf %130, %131 : vector<4x96xf32>
      %133 = vector.shape_cast %132 : vector<4x96xf32> to vector<2x2x96xf32>
      %134 = vector.shape_cast %128 : vector<2x96xf32> to vector<2x1x96xf32>
      %135 = vector.extract_strided_slice %134 {offsets = [0, 0, 0], sizes = [2, 1, 32], strides = [1, 1, 1]} : vector<2x1x96xf32> to vector<2x1x32xf32>
      %136 = vector.extract_strided_slice %133 {offsets = [0, 0, 0], sizes = [2, 2, 32], strides = [1, 1, 1]} : vector<2x2x96xf32> to vector<2x2x32xf32>
      %137 = vector.broadcast %135 : vector<2x1x32xf32> to vector<2x2x32xf32>
      %138 = arith.addf %137, %136 : vector<2x2x32xf32>
      %139 = arith.negf %138 : vector<2x2x32xf32>
      %140 = math.exp %139 : vector<2x2x32xf32>
      %cst_70 = arith.constant 1.000000e+00 : f32
      %141 = vector.broadcast %cst_70 : f32 to vector<2x2x32xf32>
      %142 = arith.addf %141, %140 : vector<2x2x32xf32>
      %143 = arith.divf %141, %142 : vector<2x2x32xf32>
      %144 = vector.extract_strided_slice %134 {offsets = [0, 0, 32], sizes = [2, 1, 32], strides = [1, 1, 1]} : vector<2x1x96xf32> to vector<2x1x32xf32>
      %145 = vector.extract_strided_slice %133 {offsets = [0, 0, 32], sizes = [2, 2, 32], strides = [1, 1, 1]} : vector<2x2x96xf32> to vector<2x2x32xf32>
      %146 = vector.broadcast %144 : vector<2x1x32xf32> to vector<2x2x32xf32>
      %147 = arith.addf %146, %145 : vector<2x2x32xf32>
      %148 = arith.negf %147 : vector<2x2x32xf32>
      %149 = math.exp %148 : vector<2x2x32xf32>
      %cst_71 = arith.constant 1.000000e+00 : f32
      %150 = vector.broadcast %cst_71 : f32 to vector<2x2x32xf32>
      %151 = arith.addf %150, %149 : vector<2x2x32xf32>
      %152 = arith.divf %150, %151 : vector<2x2x32xf32>
      %153 = vector.extract_strided_slice %134 {offsets = [0, 0, 64], sizes = [2, 1, 32], strides = [1, 1, 1]} : vector<2x1x96xf32> to vector<2x1x32xf32>
      %154 = vector.extract_strided_slice %133 {offsets = [0, 0, 64], sizes = [2, 2, 32], strides = [1, 1, 1]} : vector<2x2x96xf32> to vector<2x2x32xf32>
      %155 = arith.mulf %143, %154 : vector<2x2x32xf32>
      %156 = vector.broadcast %153 : vector<2x1x32xf32> to vector<2x2x32xf32>
      %157 = arith.addf %156, %155 : vector<2x2x32xf32>
      %158 = math.tanh %157 : vector<2x2x32xf32>
      %cst_72 = arith.constant 1.000000e+00 : f32
      %159 = vector.broadcast %cst_72 : f32 to vector<2x2x32xf32>
      %160 = arith.subf %159, %152 : vector<2x2x32xf32>
      %161 = arith.mulf %160, %158 : vector<2x2x32xf32>
      %162 = arith.mulf %152, %arg24 : vector<2x2x32xf32>
      %163 = arith.addf %161, %162 : vector<2x2x32xf32>
      %164 = vector.shape_cast %57 : vector<2x2xf32> to vector<2x2x1xf32>
      %cst_73 = arith.constant 1.000000e+00 : f32
      %165 = vector.broadcast %cst_73 : f32 to vector<2x2x1xf32>
      %166 = arith.subf %165, %164 : vector<2x2x1xf32>
      %167 = vector.broadcast %166 : vector<2x2x1xf32> to vector<2x2x32xf32>
      %168 = arith.mulf %arg24, %167 : vector<2x2x32xf32>
      %169 = vector.broadcast %164 : vector<2x2x1xf32> to vector<2x2x32xf32>
      %170 = arith.mulf %163, %169 : vector<2x2x32xf32>
      %171 = arith.addf %168, %170 : vector<2x2x32xf32>
      %172 = vector.shape_cast %60 : vector<2x2xf32> to vector<2x2x1xf32>
      %173 = vector.broadcast %172 : vector<2x2x1xf32> to vector<2x2x32xf32>
      %174 = arith.mulf %171, %173 : vector<2x2x32xf32>
      %cst_74 = arith.constant dense<0.000000e+00> : vector<2x32xf32>
      %175 = vector.multi_reduction <add>, %174, %cst_74 [1] : vector<2x2x32xf32> to vector<2x32xf32>
      %cst_75 = arith.constant dense<0.000000e+00> : vector<2x96xf32>
      %176 = tpu.matmul %175, %10, %cst_75 {dimension_numbers = #tpu.dot_dimension_numbers<[1], [0], [0], [1], [0, 0, 1, 1], [], []>} : vector<2x32xf32>, vector<32x96xf32>, vector<2x96xf32> -> vector<2x96xf32>
      %177 = vector.broadcast %12 : vector<1x96xf32> to vector<2x96xf32>
      %178 = arith.addf %176, %177 : vector<2x96xf32>
      %cst_76 = arith.constant dense<0.000000e+00> : vector<2x96xf32>
      %179 = tpu.matmul %arg25, %11, %cst_76 {dimension_numbers = #tpu.dot_dimension_numbers<[1], [0], [0], [1], [0, 0, 1, 1], [], []>} : vector<2x32xf32>, vector<32x96xf32>, vector<2x96xf32> -> vector<2x96xf32>
      %180 = vector.broadcast %13 : vector<1x96xf32> to vector<2x96xf32>
      %181 = arith.addf %179, %180 : vector<2x96xf32>
      %182 = vector.extract_strided_slice %178 {offsets = [0, 0], sizes = [2, 32], strides = [1, 1]} : vector<2x96xf32> to vector<2x32xf32>
      %183 = vector.extract_strided_slice %181 {offsets = [0, 0], sizes = [2, 32], strides = [1, 1]} : vector<2x96xf32> to vector<2x32xf32>
      %184 = arith.addf %182, %183 : vector<2x32xf32>
      %185 = arith.negf %184 : vector<2x32xf32>
      %186 = math.exp %185 : vector<2x32xf32>
      %cst_77 = arith.constant 1.000000e+00 : f32
      %187 = vector.broadcast %cst_77 : f32 to vector<2x32xf32>
      %188 = arith.addf %187, %186 : vector<2x32xf32>
      %189 = arith.divf %187, %188 : vector<2x32xf32>
      %190 = vector.extract_strided_slice %178 {offsets = [0, 32], sizes = [2, 32], strides = [1, 1]} : vector<2x96xf32> to vector<2x32xf32>
      %191 = vector.extract_strided_slice %181 {offsets = [0, 32], sizes = [2, 32], strides = [1, 1]} : vector<2x96xf32> to vector<2x32xf32>
      %192 = arith.addf %190, %191 : vector<2x32xf32>
      %193 = arith.negf %192 : vector<2x32xf32>
      %194 = math.exp %193 : vector<2x32xf32>
      %cst_78 = arith.constant 1.000000e+00 : f32
      %195 = vector.broadcast %cst_78 : f32 to vector<2x32xf32>
      %196 = arith.addf %195, %194 : vector<2x32xf32>
      %197 = arith.divf %195, %196 : vector<2x32xf32>
      %198 = vector.extract_strided_slice %178 {offsets = [0, 64], sizes = [2, 32], strides = [1, 1]} : vector<2x96xf32> to vector<2x32xf32>
      %199 = vector.extract_strided_slice %181 {offsets = [0, 64], sizes = [2, 32], strides = [1, 1]} : vector<2x96xf32> to vector<2x32xf32>
      %200 = arith.mulf %189, %199 : vector<2x32xf32>
      %201 = arith.addf %198, %200 : vector<2x32xf32>
      %202 = math.tanh %201 : vector<2x32xf32>
      %cst_79 = arith.constant 1.000000e+00 : f32
      %203 = vector.broadcast %cst_79 : f32 to vector<2x32xf32>
      %204 = arith.subf %203, %197 : vector<2x32xf32>
      %205 = arith.mulf %204, %202 : vector<2x32xf32>
      %206 = arith.mulf %197, %arg25 : vector<2x32xf32>
      %207 = arith.addf %205, %206 : vector<2x32xf32>
      %208 = arith.index_cast %arg22 : i32 to index
      %c0_80 = arith.constant 0 : index
      %c0_81 = arith.constant 0 : index
      %209 = vector.load %arg19[%208, %c0_80, %c0_81] : memref<8x2x32xf32, #tpu.memory_space<vmem>>, vector<1x2x32xf32>
      %210 = vector.shape_cast %209 : vector<1x2x32xf32> to vector<2x32xf32>
      %211 = vector.shape_cast %207 : vector<2x32xf32> to vector<1x2x32xf32>
      tpu.vector_store %arg19[%208, %c0_80, %c0_81], %211 {strides = array<i32>} : memref<8x2x32xf32, #tpu.memory_space<vmem>>, vector<1x2x32xf32>,
      scf.yield %98, %171, %207, %112, %118, %123 : vector<2x32xf32>, vector<2x2x32xf32>, vector<2x32xf32>, vector<2x1xf32>, vector<2x1xf32>, vector<2x32xf32>
    }
    %c8_i32_34 = arith.constant 8 : i32
    %c0_35 = arith.constant 0 : index
    %c0_36 = arith.constant 0 : index
    %c0_37 = arith.constant 0 : index
    %23 = vector.load %arg21[%c0_35, %c0_36, %c0_37] : memref<8x2x1xf32, #tpu.memory_space<vmem>>, vector<8x2x1xf32>
    %24 = vector.shape_cast %23 : vector<8x2x1xf32> to vector<8x2xf32>
    %25 = tpu.transpose %24, [1, 0] : vector<8x2xf32> -> vector<2x8xf32>
    %26 = tpu.iota {dimensions = array<i32: 0>} : vector<8x2x8xi32>
    %27 = tpu.iota {dimensions = array<i32: 2>} : vector<8x2x8xi32>
    %28 = arith.cmpi slt, %27, %26 : vector<8x2x8xi32>
    %29 = vector.shape_cast %25 : vector<2x8xf32> to vector<1x2x8xf32>
    %cst_38 = arith.constant -1.000000e+30 : f32
    %30 = vector.shape_cast %29 : vector<1x2x8xf32> to vector<1x2x8xf32>
    %31 = vector.broadcast %30 : vector<1x2x8xf32> to vector<8x2x8xf32>
    %32 = vector.broadcast %cst_38 : f32 to vector<8x2x8xf32>
    %33 = arith.select %28, %31, %32 : vector<8x2x8xi1>, vector<8x2x8xf32>
    %cst_39 = arith.constant dense<0xFF800000> : vector<8x2xf32>
    %34 = vector.multi_reduction <maximumf>, %33, %cst_39 [2] : vector<8x2x8xf32> to vector<8x2xf32>
    %35 = vector.shape_cast %34 : vector<8x2xf32> to vector<8x2x1xf32>
    %36 = vector.broadcast %35 : vector<8x2x1xf32> to vector<8x2x8xf32>
    %37 = arith.subf %33, %36 : vector<8x2x8xf32>
    %38 = math.exp %37 : vector<8x2x8xf32>
    %cst_40 = arith.constant 0.000000e+00 : f32
    %39 = vector.broadcast %cst_40 : f32 to vector<8x2x8xf32>
    %40 = arith.select %28, %38, %39 : vector<8x2x8xi1>, vector<8x2x8xf32>
    %cst_41 = arith.constant dense<0.000000e+00> : vector<8x2xf32>
    %41 = vector.multi_reduction <add>, %40, %cst_41 [2] : vector<8x2x8xf32> to vector<8x2xf32>
    %42 = vector.shape_cast %41 : vector<8x2xf32> to vector<8x2x1xf32>
    %cst_42 = arith.constant 0.000000e+00 : f32
    %43 = vector.broadcast %cst_42 : f32 to vector<8x2x1xf32>
    %44 = arith.cmpf ogt, %42, %43 : vector<8x2x1xf32>
    %cst_43 = arith.constant 1.000000e+00 : f32
    %45 = vector.broadcast %cst_43 : f32 to vector<8x2x1xf32>
    %46 = arith.divf %45, %42 : vector<8x2x1xf32>
    %cst_44 = arith.constant 0.000000e+00 : f32
    %47 = vector.broadcast %cst_44 : f32 to vector<8x2x1xf32>
    %48 = arith.select %44, %46, %47 : vector<8x2x1xi1>, vector<8x2x1xf32>
    %49 = vector.broadcast %48 : vector<8x2x1xf32> to vector<8x2x8xf32>
    %50 = arith.mulf %40, %49 : vector<8x2x8xf32>
    %c0_45 = arith.constant 0 : index
    %c0_46 = arith.constant 0 : index
    %c0_47 = arith.constant 0 : index
    %51 = vector.load %arg20[%c0_45, %c0_46, %c0_47] : memref<8x2x8xf32, #tpu.memory_space<vmem>>, vector<8x2x8xf32>
    tpu.vector_store %arg20[%c0_45, %c0_46, %c0_47], %50 {strides = array<i32>} : memref<8x2x8xf32, #tpu.memory_space<vmem>>, vector<8x2x8xf32>,
    return
  }
  func.func @transform_0(%arg0: i32) -> (i32, i32, i32) {
    %c0_i32 = arith.constant 0 : i32
    %c0_i32_0 = arith.constant 0 : i32
    %c0_i32_1 = arith.constant 0 : i32
    return %c0_i32, %arg0, %c0_i32_0 : i32, i32, i32
  }
  func.func @transform_1(%arg0: i32) -> (i32, i32, i32) {
    %c0_i32 = arith.constant 0 : i32
    %c0_i32_0 = arith.constant 0 : i32
    %c0_i32_1 = arith.constant 0 : i32
    return %c0_i32, %arg0, %c0_i32_0 : i32, i32, i32
  }
  func.func @transform_2(%arg0: i32) -> (i32, i32, i32) {
    %c0_i32 = arith.constant 0 : i32
    %c0_i32_0 = arith.constant 0 : i32
    %c0_i32_1 = arith.constant 0 : i32
    return %c0_i32, %arg0, %c0_i32_0 : i32, i32, i32
  }
  func.func @transform_3(%arg0: i32) -> (i32, i32) {
    %c0_i32 = arith.constant 0 : i32
    %c0_i32_0 = arith.constant 0 : i32
    %c0_i32_1 = arith.constant 0 : i32
    return %c0_i32, %c0_i32_0 : i32, i32
  }
  func.func @transform_4(%arg0: i32) -> (i32, i32) {
    %c0_i32 = arith.constant 0 : i32
    %c0_i32_0 = arith.constant 0 : i32
    %c0_i32_1 = arith.constant 0 : i32
    return %c0_i32, %c0_i32_0 : i32, i32
  }
  func.func @transform_5(%arg0: i32) -> (i32, i32) {
    %c0_i32 = arith.constant 0 : i32
    %c0_i32_0 = arith.constant 0 : i32
    %c0_i32_1 = arith.constant 0 : i32
    return %c0_i32, %c0_i32_0 : i32, i32
  }
  func.func @transform_6(%arg0: i32) -> (i32, i32) {
    %c0_i32 = arith.constant 0 : i32
    %c0_i32_0 = arith.constant 0 : i32
    %c0_i32_1 = arith.constant 0 : i32
    return %c0_i32, %c0_i32_0 : i32, i32
  }
  func.func @transform_7(%arg0: i32) -> (i32, i32) {
    %c0_i32 = arith.constant 0 : i32
    %c0_i32_0 = arith.constant 0 : i32
    %c0_i32_1 = arith.constant 0 : i32
    return %c0_i32, %c0_i32_0 : i32, i32
  }
  func.func @transform_8(%arg0: i32) -> (i32, i32) {
    %c0_i32 = arith.constant 0 : i32
    %c0_i32_0 = arith.constant 0 : i32
    %c0_i32_1 = arith.constant 0 : i32
    return %c0_i32, %c0_i32_0 : i32, i32
  }
  func.func @transform_9(%arg0: i32) -> (i32, i32) {
    %c0_i32 = arith.constant 0 : i32
    %c0_i32_0 = arith.constant 0 : i32
    %c0_i32_1 = arith.constant 0 : i32
    return %c0_i32, %c0_i32_0 : i32, i32
  }
  func.func @transform_10(%arg0: i32) -> (i32, i32) {
    %c0_i32 = arith.constant 0 : i32
    %c0_i32_0 = arith.constant 0 : i32
    %c0_i32_1 = arith.constant 0 : i32
    return %c0_i32, %c0_i32_0 : i32, i32
  }
  func.func @transform_11(%arg0: i32) -> (i32, i32) {
    %c0_i32 = arith.constant 0 : i32
    %c0_i32_0 = arith.constant 0 : i32
    %c0_i32_1 = arith.constant 0 : i32
    return %c0_i32, %c0_i32_0 : i32, i32
  }
  func.func @transform_12(%arg0: i32) -> (i32, i32) {
    %c0_i32 = arith.constant 0 : i32
    %c0_i32_0 = arith.constant 0 : i32
    %c0_i32_1 = arith.constant 0 : i32
    return %c0_i32, %c0_i32_0 : i32, i32
  }
  func.func @transform_13(%arg0: i32) -> (i32, i32) {
    %c0_i32 = arith.constant 0 : i32
    %c0_i32_0 = arith.constant 0 : i32
    %c0_i32_1 = arith.constant 0 : i32
    return %c0_i32, %c0_i32_0 : i32, i32
  }
  func.func @transform_14(%arg0: i32) -> (i32, i32) {
    %c0_i32 = arith.constant 0 : i32
    %c0_i32_0 = arith.constant 0 : i32
    %c0_i32_1 = arith.constant 0 : i32
    return %c0_i32, %c0_i32_0 : i32, i32
  }
  func.func @transform_15(%arg0: i32) -> (i32, i32) {
    %c0_i32 = arith.constant 0 : i32
    %c0_i32_0 = arith.constant 0 : i32
    %c0_i32_1 = arith.constant 0 : i32
    return %c0_i32, %c0_i32_0 : i32, i32
  }
  func.func @transform_16(%arg0: i32) -> (i32, i32) {
    %c0_i32 = arith.constant 0 : i32
    %c0_i32_0 = arith.constant 0 : i32
    %c0_i32_1 = arith.constant 0 : i32
    return %c0_i32, %c0_i32_0 : i32, i32
  }
  func.func @transform_17(%arg0: i32) -> (i32, i32) {
    %c0_i32 = arith.constant 0 : i32
    %c0_i32_0 = arith.constant 0 : i32
    %c0_i32_1 = arith.constant 0 : i32
    return %c0_i32, %c0_i32_0 : i32, i32
  }
  func.func @transform_18(%arg0: i32) -> (i32, i32, i32) {
    %c0_i32 = arith.constant 0 : i32
    %c0_i32_0 = arith.constant 0 : i32
    %c0_i32_1 = arith.constant 0 : i32
    return %c0_i32, %arg0, %c0_i32_0 : i32, i32, i32
  }
  func.func @transform_19(%arg0: i32) -> (i32, i32, i32) {
    %c0_i32 = arith.constant 0 : i32
    %c0_i32_0 = arith.constant 0 : i32
    %c0_i32_1 = arith.constant 0 : i32
    return %c0_i32, %arg0, %c0_i32_0 : i32, i32, i32
  }
}

</mosaic_0001>

<bundles_post_ra>
// kernel: tpu_custom_call.1
= control target key start
LH: loop header
LB: loop body
LE: loop exit
PB: predicated region body
PF: predicated region fallthrough
CT: control target
= control target key end

     0   :  { %s2901_s0 = inlined_call_operand.hbm [shape: f32[8,2,32], index: 0, kind: input, shape index: {}]   ;;  %s2902_s1 = inlined_call_operand.vmem [shape: f32[8,2,2], index: 1, kind: input, shape index: {}]   ;;  %s2903_s2 = inlined_call_operand.vmem [shape: f32[8,2,2], index: 2, kind: input, shape index: {}]   ;;  %s2904_s3 = inlined_call_operand.vmem [shape: f32[32,96], index: 3, kind: input, shape index: {}]   ;;  %s2905_s4 = inlined_call_operand.vmem [shape: f32[32,96], index: 4, kind: input, shape index: {}]   ;;  %s2906_s5 = inlined_call_operand.hbm [shape: f32[32,96], index: 5, kind: input, shape index: {}]   ;;  %s2907_s6 = inlined_call_operand.vmem [shape: f32[1,96], index: 6, kind: input, shape index: {}]   ;;  %s2908_s7 = inlined_call_operand.vmem [shape: f32[1,96], index: 7, kind: input, shape index: {}]   ;;  %s2909_s8 = inlined_call_operand.vmem [shape: f32[32,96], index: 8, kind: input, shape index: {}]   ;;  %s2910_s9 = inlined_call_operand.hbm [shape: f32[32,96], index: 9, kind: input, shape index: {}]   ;;  %s2911_s10 = inlined_call_operand.hbm [shape: f32[32,96], index: 10, kind: input, shape index: {}]   ;;  %s2912_s11 = inlined_call_operand.vmem [shape: f32[1,96], index: 11, kind: input, shape index: {}]   ;;  %s2913_s12 = inlined_call_operand.vmem [shape: f32[1,96], index: 12, kind: input, shape index: {}]   ;;  %s2914_s13 = inlined_call_operand.hbm [shape: f32[32,96], index: 13, kind: input, shape index: {}]   ;;  %s2915_s14 = inlined_call_operand.hbm [shape: f32[32,96], index: 14, kind: input, shape index: {}]   ;;  %s2916_s15 = inlined_call_operand.vmem [shape: f32[1,96], index: 15, kind: input, shape index: {}]   ;;  %s2917_s16 = inlined_call_operand.vmem [shape: f32[1,96], index: 16, kind: input, shape index: {}]   ;;  %s2918_s17 = inlined_call_operand.vmem [shape: f32[32,1], index: 17, kind: input, shape index: {}]   ;;  %s2919_s18 = inlined_call_operand.hbm [shape: f32[8,2,32], index: 18, kind: output, shape index: {0}]   ;;  %s2920_s19 = inlined_call_operand.hbm [shape: f32[8,2,8], index: 19, kind: output, shape index: {1}]  }
   0x1   :  { %2932 = sst [smem:[#allocation33_spill]] %s2901_s0 }
   0x2   :  { %2933 = sst [smem:[#allocation34_spill]] %s2902_s1 }
   0x3   :  { %2934 = sst [smem:[#allocation35_spill]] %s2903_s2 }
   0x4   :  { %2935 = sst [smem:[#allocation36_spill]] %s2904_s3 }
   0x5   :  { %2936 = sst [smem:[#allocation37_spill]] %s2920_s19 }
   0x6   :  { %25 = vsyncpa [#allocation4], 0 }
   0x7   :  { %26 = vsyncpa [#allocation7], 0 }
   0x8   :  { %27 = vsyncpa [#allocation10], 0 }
   0x9   :  { %28 = vsyncpa [#allocation13], 0 }
   0xa   :  { %29 = vsyncpa [#allocation5], 0 }
   0xb   :  { %30 = vsyncpa [#allocation16], 0  ;;  %s2157_s0 = smov [#allocation6]   ;;  %s1905_s1 = scalar_lea.hbm %s2906_s5, 512 }
   0xc   :  { %s56_s30 = sshll.u32 %s2157_s0, 4  ;;  %p1906_p0 = scmp.ne.s32.totalorder %s2906_s5, %s1905_s1  ;;  %s57_s30 = int_to_ptr.vmem [resolvable:$true] %s56_s30 }
   0xd   :  { %p1909_p1 = scmp.lt.u32.totalorder %s1905_s1, %s2906_s5 }
   0xf   :  { %p1911_p2 = pnand %p1909_p1, %p1906_p0 }
  0x11   :  { %1914 = shalt.err (!%p1911_p2)
}
  0x12   :  { %s1915_s25 = scalar_lea.vmem %s57_s30, 512  ;;  %p1920_p4 = scmp.lt.s32.totalorder %s57_s30, %s57_s30 }
  0x13   :  { %p1916_p3 = scmp.ne.s32.totalorder %s57_s30, %s1915_s25  ;;  %p1921_p5 = scmp.lt.s32.totalorder %s1915_s25, %s1915_s25 }
  0x15   :  { %p1922_p6 = por %p1921_p5, %p1920_p4 }
  0x17   :  { %p1923_p7 = pnand %p1922_p6, %p1916_p3 }
  0x19   :  { %1926 = shalt.err (!%p1923_p7)
}
  0x1a   :  { %s2924_s3 = smov 128   ;;  %s2159_s26 = smov 8  }
  0x1b   :  { %62 = dma.hbm_to_vmem [thread:$0]  %s2906_s5, 512, %s57_s30, [#allocation7], %s2924_s3, %s2924_s3, %s2159_s26  }
  0x1c   :  { %s2160_s29 = smov [#allocation9]   ;;  %s2161_s20 = smov [#allocation3]  }
  0x1d   :  { %s86_s0 = sshll.u32 %s2160_s29, 4  ;;  %s36_s21 = sshll.u32 %s2161_s20, 4  ;;  %s87_s0 = int_to_ptr.vmem [resolvable:$true] %s86_s0  ;;  %s37_s21 = int_to_ptr.vmem [resolvable:$true] %s36_s21 }
  0x1e   :  { %s1927_s2 = scalar_lea.hbm %s2911_s10, 512 }
  0x1f   :  { %p1928_p8 = scmp.ne.s32.totalorder %s2911_s10, %s1927_s2  ;;  %p1931_p9 = scmp.lt.u32.totalorder %s1927_s2, %s2911_s10 }
  0x21   :  { %p1933_p10 = pnand %p1931_p9, %p1928_p8 }
  0x23   :  { %1936 = shalt.err (!%p1933_p10)
}
  0x24   :  { %s1937_s5 = scalar_lea.vmem %s87_s0, 512  ;;  %p1942_p12 = scmp.lt.s32.totalorder %s87_s0, %s87_s0 }
  0x25   :  { %p1938_p11 = scmp.ne.s32.totalorder %s87_s0, %s1937_s5  ;;  %p1943_p13 = scmp.lt.s32.totalorder %s1937_s5, %s1937_s5 }
  0x27   :  { %p1944_p0 = por %p1943_p13, %p1942_p12 }
  0x29   :  { %p1945_p1 = pnand %p1944_p0, %p1938_p11 }
  0x2b   :  { %1948 = shalt.err (!%p1945_p1)
}
  0x2c   :  { %92 = dma.hbm_to_vmem [thread:$0]  %s2911_s10, 512, %s87_s0, [#allocation10], %s2924_s3, %s2924_s3, %s2159_s26  }
  0x2d   :  { %s2937_s29 = sld [smem:[#allocation33_spill]] }
  0x33   :  { %s1949_s20 = scalar_lea.hbm %s2937_s29, 256 }
  0x34   :  { %p1950_p2 = scmp.ne.s32.totalorder %s2937_s29, %s1949_s20  ;;  %p1953_p3 = scmp.lt.u32.totalorder %s1949_s20, %s2937_s29 }
  0x36   :  { %p1955_p4 = pnand %p1953_p3, %p1950_p2 }
  0x38   :  { %1958 = shalt.err (!%p1955_p4)
}
  0x39   :  { %s1959_s24 = scalar_lea.vmem %s37_s21, 256  ;;  %p1964_p6 = scmp.lt.s32.totalorder %s37_s21, %s37_s21 }
  0x3a   :  { %p1960_p5 = scmp.ne.s32.totalorder %s37_s21, %s1959_s24  ;;  %p1965_p7 = scmp.lt.s32.totalorder %s1959_s24, %s1959_s24 }
  0x3c   :  { %p1966_p8 = por %p1965_p7, %p1964_p6 }
  0x3e   :  { %p1967_p9 = pnand %p1966_p8, %p1960_p5 }
  0x40   :  { %1970 = shalt.err (!%p1967_p9)
}
  0x41   :  { %s2162_s10 = smov 32   ;;  %s2163_s0 = smov 2  }
  0x42   :  { %42 = dma.hbm_to_vmem [thread:$0]  %s2937_s29, 256, %s37_s21, [#allocation4], %s2162_s10, %s2162_s10, %s2163_s0  }
  0x43   :  { %s2164_s30 = smov [#allocation8]   ;;  %s2165_s28 = smov [#allocation11]  }
  0x44   :  { %s74_s27 = sshll.u32 %s2164_s30, 4  ;;  %s102_s19 = sshll.u32 %s2165_s28, 4  ;;  %s75_s27 = int_to_ptr.vmem [resolvable:$true] %s74_s27  ;;  %s103_s19 = int_to_ptr.vmem [resolvable:$true] %s102_s19 }
  0x45   :  { %s1971_s22 = scalar_lea.hbm %s2910_s9, 512 }
  0x46   :  { %p1972_p10 = scmp.ne.s32.totalorder %s2910_s9, %s1971_s22  ;;  %p1975_p11 = scmp.lt.u32.totalorder %s1971_s22, %s2910_s9 }
  0x48   :  { %p1977_p12 = pnand %p1975_p11, %p1972_p10 }
  0x4a   :  { %1980 = shalt.err (!%p1977_p12)
}
  0x4b   :  { %s1981_s21 = scalar_lea.vmem %s75_s27, 512  ;;  %p1986_p0 = scmp.lt.s32.totalorder %s75_s27, %s75_s27 }
  0x4c   :  { %p1982_p13 = scmp.ne.s32.totalorder %s75_s27, %s1981_s21  ;;  %p1987_p1 = scmp.lt.s32.totalorder %s1981_s21, %s1981_s21 }
  0x4e   :  { %p1988_p2 = por %p1987_p1, %p1986_p0 }
  0x50   :  { %p1989_p3 = pnand %p1988_p2, %p1982_p13 }
  0x52   :  { %1992 = shalt.err (!%p1989_p3)
}
  0x53   :  { %s2938_s29 = smov 128   ;;  %s1993_s28 = scalar_lea.hbm %s2914_s13, 512 }
  0x54   :  { %80 = dma.hbm_to_vmem [thread:$0]  %s2910_s9, 512, %s75_s27, [#allocation7], %s2938_s29, %s2938_s29, %s2159_s26  }
  0x55   :  { %p1994_p4 = scmp.ne.s32.totalorder %s2914_s13, %s1993_s28  ;;  %p1997_p5 = scmp.lt.u32.totalorder %s1993_s28, %s2914_s13 }
  0x57   :  { %p1999_p6 = pnand %p1997_p5, %p1994_p4 }
  0x59   :  { %2002 = shalt.err (!%p1999_p6)
}
  0x5a   :  { %s2003_s23 = scalar_lea.vmem %s103_s19, 512  ;;  %p2008_p8 = scmp.lt.s32.totalorder %s103_s19, %s103_s19 }
  0x5b   :  { %p2004_p7 = scmp.ne.s32.totalorder %s103_s19, %s2003_s23  ;;  %p2009_p9 = scmp.lt.s32.totalorder %s2003_s23, %s2003_s23 }
  0x5d   :  { %p2010_p10 = por %p2009_p9, %p2008_p8 }
  0x5f   :  { %p2011_p11 = pnand %p2010_p10, %p2004_p7 }
  0x61   :  { %2014 = shalt.err (!%p2011_p11)
}
  0x62   :  { %108 = dma.hbm_to_vmem [thread:$0]  %s2914_s13, 512, %s103_s19, [#allocation10], %s2938_s29, %s2938_s29, %s2159_s26  }
  0x63   :  { %s2166_s24 = smov [#allocation12]   ;;  %s2015_s30 = scalar_lea.hbm %s2915_s14, 512 }
  0x64   :  { %s114_s21 = sshll.u32 %s2166_s24, 4  ;;  %p2016_p12 = scmp.ne.s32.totalorder %s2915_s14, %s2015_s30  ;;  %s115_s21 = int_to_ptr.vmem [resolvable:$true] %s114_s21 }
  0x65   :  { %p2019_p13 = scmp.lt.u32.totalorder %s2015_s30, %s2915_s14 }
  0x67   :  { %p2021_p0 = pnand %p2019_p13, %p2016_p12 }
  0x69   :  { %2024 = shalt.err (!%p2021_p0)
}
  0x6a   :  { %s2025_s22 = scalar_lea.vmem %s115_s21, 512  ;;  %p2030_p2 = scmp.lt.s32.totalorder %s115_s21, %s115_s21 }
  0x6b   :  { %p2026_p1 = scmp.ne.s32.totalorder %s115_s21, %s2025_s22  ;;  %p2031_p3 = scmp.lt.s32.totalorder %s2025_s22, %s2025_s22 }
  0x6d   :  { %p2032_p4 = por %p2031_p3, %p2030_p2 }
  0x6f   :  { %p2033_p5 = pnand %p2032_p4, %p2026_p1 }
  0x71   :  { %2036 = shalt.err (!%p2033_p5)
}
  0x72   :  { %120 = dma.hbm_to_vmem [thread:$0]  %s2915_s14, 512, %s115_s21, [#allocation13], %s2938_s29, %s2938_s29, %s2159_s26  }
  0x73   :  { %2113 = dma.done.wait [#allocation4], 256  }
  0x74   :  { %2114 = vsyncadd [#allocation4], 4294967040 }
  0x75   :  { %2115 = dma.done.wait [#allocation7], 1024  }
  0x76   :  { %2116 = vsyncadd [#allocation7], 4294966272 }
  0x77   :  { %2117 = dma.done.wait [#allocation10], 1024  }
  0x78   :  { %2118 = vsyncadd [#allocation10], 4294966272 }
  0x79   :  { %2119 = dma.done.wait [#allocation13], 512  }
  0x7a   :  { %2120 = vsyncadd [#allocation13], 4294966784  ;;  %s2939_s9 = sld [smem:[#allocation36_spill]]  ;;  %v2392_v4 = vld [vmem:[%s2905_s4] sm:$0xff]  ;;  %v2397_v5 = vld [vmem:[%s2905_s4 + $0x8] sm:$0xff]  ;;  %v2519_v42 = vmov 0.0  }
  0x7b   :  { %2944 = vst [vmem:[#allocation27_spill] sm:$0xff] %v2392_v4  ;;  %2945 = vst [vmem:[#allocation28_spill] sm:$0xff] %v2397_v5  ;;  %v2402_v6 = vld [vmem:[%s2905_s4 + $0x10] sm:$0xff]  ;;  %v2407_v7 = vld [vmem:[%s2905_s4 + $0x18] sm:$0xff]  ;;  %v2521_v43 = vmov 0.0   ;;  %v2525_v45 = vmov 0.0  }
  0x7c   :  { %2946 = vst [vmem:[#allocation29_spill] sm:$0xff] %v2402_v6  ;;  %2947 = vst [vmem:[#allocation30_spill] sm:$0xff] %v2407_v7  ;;  %v2409_v8 = vld [vmem:[#allocation6] sm:$0xff]  ;;  %v2411_v9 = vld [vmem:[#allocation6 + $0x8] sm:$0xff]  ;;  %v2523_v44 = vmov -1e+30  }
  0x7d   :  { %2948 = vst [vmem:[#allocation31_spill] sm:$0xff] %v2409_v8  ;;  %2949 = vst [vmem:[#allocation32_spill] sm:$0xff] %v2411_v9  ;;  %v2413_v10 = vld [vmem:[#allocation6 + $0x10] sm:$0xff]  ;;  %v2415_v11 = vld [vmem:[#allocation6 + $0x18] sm:$0xff]  ;;  %v2527_v46 = vmov 0.0   ;;  %v2529_v47 = vmov 0.0  }
  0x7e   :  { %v2420_v12 = vld [vmem:[%s2907_s6] ss:$0 sm:$0xff]  ;;  %v2435_v15 = vld [vmem:[%s2909_s8 + $0x8] sm:$0xff]  ;;  %v2440_v16 = vld [vmem:[%s2909_s8 + $0x10] sm:$0xff]  ;;  %v2531_v48 = vmov 0.0  }
  0x7f   :  { %v2425_v13 = vld [vmem:[%s2908_s7] ss:$0 sm:$0xff]  ;;  %v2445_v17 = vld [vmem:[%s2909_s8 + $0x18] sm:$0xff]  ;;  %v2449_v19 = vld [vmem:[#allocation8 + $0x8] sm:$0xff] }
  0x80   :  { %v2372_v0 = vld [vmem:[%s2939_s9] sm:$0xff]  ;;  %v2377_v1 = vld [vmem:[%s2939_s9 + $0x8] sm:$0xff]  ;;  %v2382_v2 = vld [vmem:[%s2939_s9 + $0x10] sm:$0xff] }
  0x81   :  { %2940 = vst [vmem:[#allocation23_spill] sm:$0xff] %v2372_v0  ;;  %2941 = vst [vmem:[#allocation24_spill] sm:$0xff] %v2377_v1  ;;  %v2387_v3 = vld [vmem:[%s2939_s9 + $0x18] sm:$0xff]  ;;  %v2430_v14 = vld [vmem:[%s2909_s8] sm:$0xff] }
  0x82   :  { %2942 = vst [vmem:[#allocation25_spill] sm:$0xff] %v2382_v2  ;;  %2943 = vst [vmem:[#allocation26_spill] sm:$0xff] %v2387_v3  ;;  %v2447_v18 = vld [vmem:[#allocation8] sm:$0xff]  ;;  %v2451_v20 = vld [vmem:[#allocation8 + $0x10] sm:$0xff] }
  0x83   :  { %v2453_v21 = vld [vmem:[#allocation8 + $0x18] sm:$0xff]  ;;  %v2455_v22 = vld [vmem:[#allocation9] sm:$0xff]  ;;  %v2457_v23 = vld [vmem:[#allocation9 + $0x8] sm:$0xff] }
  0x84   :  { %v2459_v24 = vld [vmem:[#allocation9 + $0x10] sm:$0xff]  ;;  %v2461_v25 = vld [vmem:[#allocation9 + $0x18] sm:$0xff]  ;;  %v2466_v26 = vld [vmem:[%s2912_s11] ss:$0 sm:$0xff] }
  0x85   :  { %v2471_v27 = vld [vmem:[%s2913_s12] ss:$0 sm:$0xff]  ;;  %v2475_v29 = vld [vmem:[#allocation11 + $0x8] sm:$0xff]  ;;  %v2477_v30 = vld [vmem:[#allocation11 + $0x10] sm:$0xff] }
  0x86   :  { %v2473_v28 = vld [vmem:[#allocation11] sm:$0xff]  ;;  %v2479_v31 = vld [vmem:[#allocation11 + $0x18] sm:$0xff]  ;;  %v2483_v33 = vld [vmem:[#allocation12 + $0x8] sm:$0xff] }
  0x87   :  { %v2481_v32 = vld [vmem:[#allocation12] sm:$0xff]  ;;  %v2485_v34 = vld [vmem:[#allocation12 + $0x10] sm:$0xff]  ;;  %v2487_v35 = vld [vmem:[#allocation12 + $0x18] sm:$0xff] }
  0x88   :  { %v2492_v36 = vld [vmem:[%s2916_s15] ss:$0 sm:$0xff]  ;;  %v2507_v39 = vld [vmem:[%s2918_s17 + $0x8] sm:$0xff]  ;;  %v2512_v40 = vld [vmem:[%s2918_s17 + $0x10] sm:$0xff] }
  0x89   :  { %v2497_v37 = vld [vmem:[%s2917_s16] ss:$0 sm:$0xff]  ;;  %v2517_v41 = vld [vmem:[%s2918_s17 + $0x18] sm:$0xff]  ;;  %s2533_s16 = smov 0  }
  0x8a   :  { %v2502_v38 = vld [vmem:[%s2918_s17] sm:$0xff] }
  0x8b LB: > { %v2926_v49 = vlaneseq  ;;  %s2560_s17 = sshll.u32 %s2155_s16, 1  ;;  %s2950_s4 = sld [smem:[#allocation35_spill]]  ;;  %v2951_v4 = vld [vmem:[#allocation27_spill] sm:$0xff]  ;;  %v2952_v5 = vld [vmem:[#allocation28_spill] sm:$0xff]  ;;  %v2928_v58 = vmov 0.0|0.0   ;;  %v2955_v6 = vld [vmem:[#allocation29_spill] sm:$0xff]  ;;  %1843 = vrcp.f32 %v2131_v43  ;;  %s2155_s16 = sphi %s2533_s16, %s192_s16   ;;  %v2151_v48 = vphi %v2531_v48, %v2655_v48   ;;  %v2147_v47 = vphi %v2529_v47, %v2731_v47   ;;  %v2143_v46 = vphi %v2527_v46, %v2737_v46   ;;  %v2139_v45 = vphi %v2525_v45, %v1191_v45   ;;  %v2135_v44 = vphi %v2523_v44, %v2965_v44   ;;  %v2131_v43 = vphi %v2521_v43, %v2703_v43   ;;  %v2127_v42 = vphi %v2519_v42, %v613_v42  }
  0x8c   : > { %v1702_v56 = vpack.c.bf16 %v2952_v5, %v2951_v4  ;;  %v2953_v0 = vld [vmem:[#allocation23_spill] sm:$0xff]  ;;  %v2954_v1 = vld [vmem:[#allocation24_spill] sm:$0xff]  ;;  %1701 = vmatprep.subr.bf16.mxu0 %v2928_v58  ;;  %1707 = vmatprep.subr.bf16.mxu1 %v2928_v58  ;;  %v2956_v7 = vld [vmem:[#allocation30_spill] sm:$0xff]  ;;  %vm2168_vm0 = vmmov 0   ;;  %v2930_v61 = vmov 0.0   ;;  %vm223_vm1 = vcmask 517376  }
  0x8d   : > { %v2563_v50 = vshrl.u32 %v2926_v49, 7  ;;  %v1708_v57 = vpack.c.bf16 %v2954_v1, %v2953_v0  ;;  %v1705_v59 = vpack.c.bf16 %v2956_v7, %v2955_v6  ;;  %v2957_v2 = vld [vmem:[#allocation25_spill] sm:$0xff]  ;;  %v2958_v3 = vld [vmem:[#allocation26_spill] sm:$0xff]  ;;  %1610 = vmatprep.mubr.msk.f32.mxu0 %vm2168_vm0, %v2930_v61  ;;  %1621 = vmatprep.mubr.msk.f32.mxu1 %vm2168_vm0, %v2930_v61  ;;  %vm244_vm2 = vcmask 261120   ;;  %s201_s27 = scalar_lea.vmem [#allocation3], %s2560_s17  ;;  %s2170_s24 = smov 96  }
  0x8e   : > { %1703 = vmatpush3.bf16.msra.mxu0 %v1702_v56  ;;  %v1711_v60 = vpack.c.bf16 %v2958_v3, %v2957_v2  ;;  %vm240_vm3 = vcmask 1041409   ;;  %v2959_v8 = vld [vmem:[#allocation31_spill] sm:$0xff]  ;;  %v2960_v9 = vld [vmem:[#allocation32_spill] sm:$0xff]  ;;  %vm504_vm4 = vcmp.gt.f32.partialorder %v2131_v43, 0.0  ;;  %s2172_s25 = smov 64   ;;  %v774_v6 = vcombine.low %v2147_v47, %v2143_v46  ;;  %s589_s14 = scalar_lea.vmem [#allocation2], %s2560_s17 }
  0x8f   : > { %v2570_v52 = vsub.s32 0, %v2563_v50  ;;  %v2927_v53 = vsub.s32 1, %v2563_v50  ;;  %1709 = vmatpush3.bf16.msra.mxu1 %v1708_v57  ;;  %1704 = vmatprep.subr.bf16.mxu0 %v2928_v58  ;;  %vm590_vm5 = vcmask 1024   ;;  %s2963_s7 = sld [smem:[#allocation34_spill]]  ;;  %vm1197_vm6 = vcmask 254976   ;;  %s1196_s8 = scalar_lea.vmem [#allocation14], %s2560_s17 }
  0x90   : > { %1710 = vmatprep.subr.bf16.mxu1 %v2928_v58  ;;  %s192_s16 = sadd.s32 1, %s2155_s16  }
  0x91   : > { %s205_s9 = scalar_lea.vmem %s2950_s4, %s2560_s17  ;;  %p189_p6 = scmp.ge.s32.totalorder %s192_s16, 8  }
  0x92   : > { %v206_v51 = vld [vmem:[%s205_s9] sm:$0x3]  ;;  %1706 = vmatpush3.bf16.msra.mxu0 %v1705_v59  ;;  %vm1275_vm7 = vcmask (%p189_p6), 1042434   ;;  %vm1277_vm8 = vcmask (%p189_p6), 1043459   ;;  %vm1279_vm9 = vcmask (%p189_p6), 1044484   ;;  %vm1281_vm10 = vcmask (%p189_p6), 1045509  }
  0x93   : > { %v210_v54 = vrot.slane %v206_v51, %v2570_v52  ;;  %v217_v55 = vrot.slane %v206_v51, %v2927_v53  ;;  %1712 = vmatpush3.bf16.msra.mxu1 %v1711_v60  ;;  %1713 = vmatprep.subr.bf16.mxu0 %v2928_v58  ;;  %v2605_v60 = vld [vmem:[%s201_s27] sm:$0x3]  ;;  %vm1283_vm11 = vcmask (%p189_p6), 1046534   ;;  %vm1285_vm12 = vcmask (%p189_p6), 1047559   ;;  %s2177_s21 = smov (%p189_p6), [#allocation14]  }
  0x94   : > { %1719 = vmatprep.subr.bf16.mxu1 %v2928_v58  ;;  %vm1336_vm15 = vcmask (%p189_p6), 58368   ;;  %s1470_s11 = sshll.u32 (%p189_p6), %s2177_s21, 4  ;;  %s1471_s11 = int_to_ptr.vmem [resolvable:$true] %s1470_s11 }
  0x95   : > { %212 = vbcast.lane.b32.xlu0 %v210_v54, 256  ;;  %s203_s29 = scalar_lea.vmem %s2963_s7, %s2560_s17  ;;  %s2037_s5 = scalar_lea.vmem (%p189_p6), %s1471_s11, 256 }
  0x96   : > { %1622 = vmatmul.mubr.msk.f32.vlgmr.msra.gmra.mrb[0].mxu1 %vm244_vm2, %v2605_v60  ;;  %p2038_p7 = scmp.ne.s32.totalorder (%p189_p6), %s1471_s11, %s2037_s5  ;;  %p2042_p8 = scmp.lt.s32.totalorder (%p189_p6), %s1471_s11, %s1471_s11 }
  0x97   : > { %1643 = vmatprep.mubr.msk.f32.mxu1 %vm2168_vm0, %v2930_v61  ;;  %v1714_v61 = vpack.c.bf16 %v2960_v9, %v2959_v8  ;;  %p2043_p9 = scmp.lt.s32.totalorder (%p189_p6), %s2037_s5, %s2037_s5 }
  0x99   : > { %219 = vbcast.lane.b32.xlu0 %v217_v55, 256  ;;  %p2044_p10 = por (%p189_p6), %p2043_p9, %p2042_p8 }
  0x9b   :  { %p2045_p11 = pnand (%p189_p6), %p2044_p10, %p2038_p7 }
 0x107   : > { %v2594_v62 = vpop.permute.xlu0 %212 }
 0x108   : > { %v221_v63 = vmul.f32 %v2147_v47, %v2594_v62 }
 0x10a   : > { %v224_v51 = vsel %vm223_vm1, %v221_v63, 0.0 }
 0x10b   : > { %v225_v54 = vrot.slane %v224_v51, 4  ;;  %v2599_v55 = vpop.permute.xlu0 %219 }
 0x10c   : > { %v222_v56 = vmul.f32 %v2143_v46, %v2599_v55 }
 0x10d   : > { %v226_v57 = vadd.f32 %v225_v54, %v224_v51 }
 0x10e   : > { %v231_v59 = vsel %vm223_vm1, %v222_v56, 0.0 }
 0x10f   : > { %v227_v49 = vrot.slane %v226_v57, 2  ;;  %v232_v53 = vrot.slane %v231_v59, 4 }
 0x111   : > { %v228_v63 = vadd.f32 %v227_v49, %v226_v57  ;;  %v233_v58 = vadd.f32 %v232_v53, %v231_v59 }
 0x113   : > { %v234_v0 = vrot.slane %v233_v58, 2  ;;  %v229_v2 = vrot.slane %v228_v63, 1 }
 0x115   : > { %v235_v1 = vadd.f32 %v234_v0, %v233_v58  ;;  %v230_v54 = vadd.f32 %v229_v2, %v228_v63  ;;  %v1717_v0 = vpack.c.bf16 %v2415_v11, %v2413_v10  ;;  %v2961_v2 = vmov 0.0  }
 0x116   : > { %v2171_v63 = vmov 0  }
 0x117   : > { %v236_v51 = vrot.slane %v235_v1, 1  ;;  %1841 = vset.pattern.permute.xlu0 %v2171_v63  ;;  %1842 = vset.pattern.permute.xlu1 %v2171_v63 }
 0x119   : > { %v237_v56 = vadd.f32 %v236_v51, %v235_v1  ;;  %v2962_v1 = vmov 0.0|0.0  }
 0x11b   : > { %v241_v3 = vsel %vm240_vm3, %v237_v56, %v230_v54 }
 0x11c   : > { %242 = vrot.lane.b32.xlu1 %v241_v3, %s2170_s24 }
 0x120   : > { %404 = vrot.lane.b32.xlu1 %v2151_v48, %s2170_s24 }
 0x169   : > { %v386_v53 = vpop.f32.mrb[0].mxu1 }
 0x16a   : > { %v1623_v58 = vpop.f32.mrb[1].mxu1 }
 0x18e   : > { %v243_v49 = vpop.permute.xlu1 %242 }
 0x18f   : > { %1611 = vmatmul.mubr.msk.f32.vlgmr.msra.gmra.mrb[0].mxu0 %vm244_vm2, %v243_v49  ;;  %v1844_v49 = vpop.eup %1843 }
 0x190   : > { %1715 = vmatpush3.bf16.msra.mxu0 %v1714_v61  ;;  %1632 = vmatprep.mubr.msk.f32.mxu0 %vm2168_vm0, %v2961_v2 }
 0x191   : > { %1716 = vmatprep.subr.bf16.mxu0 %v2962_v1 }
 0x192   : > { %v405_v3 = vpop.permute.xlu1 %404 }
 0x194   : > { %1718 = vmatpush3.bf16.msra.mxu0 %v1717_v0  ;;  %v507_v0 = vsel %vm504_vm4, %v1844_v49, 0.0 }
 0x195   : > { %1725 = vmatprep.subr.bf16.mxu0 %v2962_v1 }
 0x197   : > { %1633 = vmatmul.mubr.msk.f32.vlgmr.msra.gmra.mrb[2].mxu0 %vm244_vm2, %v405_v3 }
 0x198   : > { %1654 = vmatprep.mubr.msk.f32.mxu0 %vm2168_vm0, %v2961_v2 }
 0x262   : > { %v313_v61 = vpop.f32.mrb[0].mxu0 }
 0x263   : > { %v387_v57 = vadd.f32 %v386_v53, %v313_v61  ;;  %v1612_v59 = vpop.f32.mrb[1].mxu0 }
 0x265   : > { %v396_v3 = vadd.f32 %v2420_v12, %v387_v57 }
 0x26a   : > { %v474_v51 = vpop.f32.mrb[2].mxu0 }
 0x26b   : > { %v475_v54 = vadd.f32 %v2425_v13, %v474_v51  ;;  %v1634_v56 = vpop.f32.mrb[3].mxu0 }
 0x26c   : > { %v2173_v56 = vmov 1983009808  }
 0x26d   : > { %486 = vrot.lane.b32.xlu0 %v475_v54, %s2172_s25  ;;  %v478_v53 = vadd.f32 %v475_v54, %v396_v3  ;;  %v776_v5 = vunpack.c.l.s4 %v2173_v56 }
 0x26f   : > { %v1543_v58 = vmul.f32 -1.442695, %v478_v53  ;;  %v777_v49 = vunpack.c.0.s8 %v776_v5 }
 0x271   : > { %510 = vperm.xlu0 %1841, %v507_v0   ;;  %1845 = vpow2.f32 %v1543_v58  ;;  %v780_v0 = vsub.s32 %v777_v49, %v2563_v50  ;;  %v1726_v58 = vpack.c.bf16 %v2449_v19, %v2447_v18 }
 0x273   : > { %v781_v57 = vrot.slane %v774_v6, %v780_v0  ;;  %1727 = vmatpush3.bf16.msra.mxu0 %v1726_v58  ;;  %v1720_v6 = vpack.c.bf16 %v2507_v39, %v2502_v38  ;;  %v1741_v58 = vpack.c.bf16 %v2461_v25, %v2459_v24 }
 0x274   : > { %1728 = vmatprep.subr.bf16.mxu0 %v2962_v1 }
 0x275   : > { %782 = vrot.lane.b32.xlu0 %v781_v57, %s2170_s24  ;;  %1721 = vmatpush3.bf16.msra.mxu1 %v1720_v6 }
 0x276   : > { %1722 = vmatprep.subr.bf16.mxu1 %v2962_v1 }
 0x27b   : > { %v1846_v61 = vpop.eup %1845 }
 0x27c   : > { %v482_v59 = vadd.f32 1.0, %v1846_v61 }
 0x27e   : > { %1847 = vrcp.f32 %v482_v59  ;;  %v1723_v59 = vpack.c.bf16 %v2517_v41, %v2512_v40 }
 0x280   : > { %1724 = vmatpush3.bf16.msra.mxu1 %v1723_v59 }
 0x281   : > { %1731 = vmatprep.subr.bf16.mxu1 %v2962_v1 }
 0x288   : > { %v1848_v63 = vpop.eup %1847 }
 0x289   : > { %v502_v49 = vmul.f32 %v2151_v48, %v1848_v63 }
 0x2df   : > { %v487_v4 = vpop.permute.xlu0 %486 }
 0x2e0   : > { %v489_v51 = vmul.f32 %v1848_v63, %v487_v4  ;;  %v1729_v4 = vpack.c.bf16 %v2453_v21, %v2451_v20 }
 0x2e2   : > { %491 = vrot.lane.b32.xlu1 %v489_v51, %s2172_s25  ;;  %1730 = vmatpush3.bf16.msra.mxu0 %v1729_v4  ;;  %v496_v51 = vsub.f32 1.0, %v1848_v63  ;;  %v1732_v4 = vpack.c.bf16 %v2435_v15, %v2430_v14 }
 0x2e3   : > { %1737 = vmatprep.subr.bf16.mxu0 %v2962_v1 }
 0x2f0   : > { %v511_v61 = vpop.permute.xlu0 %510 }
 0x2f4   : > { %v783_v63 = vpop.permute.xlu0 %782 }
 0x354   : > { %v492_v54 = vpop.permute.xlu1 %491 }
 0x355   : > { %v494_v53 = vadd.f32 %v492_v54, %v396_v3  ;;  %v513_v3 = vmul.f32 %v2127_v42, %v511_v61  ;;  %v1738_v54 = vpack.c.bf16 %v2457_v23, %v2455_v22 }
 0x357   : > { %1849 = vtanh.f32 %v494_v53 }
 0x361   : > { %v1850_v5 = vpop.eup %1849 }
 0x362   : > { %498 = vrot.lane.b32.xlu1 %v1850_v5, %s2170_s24  ;;  %v1735_v5 = vpack.c.bf16 %v2445_v17, %v2440_v16 }
 0x366   : > { %615 = vrot.lane.b32.xlu1 %v513_v3, %s2170_s24 }
 0x3d4   : > { %v499_v56 = vpop.permute.xlu1 %498 }
 0x3d5   : > { %v501_v57 = vmul.f32 %v499_v56, %v496_v51 }
 0x3d7   : > { %v2655_v48 = vadd.f32 %v502_v49, %v501_v57  }
 0x3d8   : > { %v616_v53 = vpop.permute.xlu1 %615 }
 0x3d9   : > { %515 = vrot.lane.b32.xlu1 %v2655_v48, %s2170_s24  ;;  %1655 = vmatmul.mubr.msk.f32.vlgmr.msra.gmra.mrb[4].mxu0 %vm244_vm2, %v616_v53 }
 0x3da   : > { %1739 = vmatpush3.bf16.msra.mxu0 %v1738_v54  ;;  %1676 = vmatprep.mubr.msk.f32.mxu0 %vm2168_vm0, %v2961_v2 }
 0x3db   : > { %1740 = vmatprep.subr.bf16.mxu0 %v2962_v1 }
 0x3de   : > { %1742 = vmatpush3.bf16.msra.mxu0 %v1741_v58 }
 0x3df   : > { %1749 = vmatprep.subr.bf16.mxu0 %v2962_v1 }
 0x3e1   : > { %1677 = vmatmul.mubr.msk.f32.vlgmr.msra.gmra.mrb[6].mxu0 %vm244_vm2, %v783_v63  ;;  %v2174_v63 = vmov 1966171168  }
 0x3e2   : > { %1698 = vmatprep.mubr.msk.f32.mxu0 %vm2168_vm0, %v2961_v2 }
 0x44b   : > { %v516_v61 = vpop.permute.xlu1 %515 }
 0x44c   : > { %1644 = vmatmul.mubr.msk.f32.vlgmr.msra.gmra.mrb[2].mxu1 %vm244_vm2, %v516_v61 }
 0x44d   : > { %1733 = vmatpush3.bf16.msra.mxu1 %v1732_v4  ;;  %1665 = vmatprep.mubr.msk.f32.mxu1 %vm2168_vm0, %v2961_v2  ;;  %v869_v4 = vunpack.c.l.s4 %v2174_v63 }
 0x44e   : > { %1734 = vmatprep.subr.bf16.mxu1 %v2962_v1 }
 0x451   : > { %1736 = vmatpush3.bf16.msra.mxu1 %v1735_v5 }
 0x452   : > { %1743 = vmatprep.subr.bf16.mxu1 %v2962_v1 }
 0x454   : > { %1666 = vmatmul.mubr.msk.f32.vlgmr.msra.gmra.mrb[4].mxu1 %vm244_vm2, %v2605_v60 }
 0x455   : > { %1687 = vmatprep.mubr.msk.f32.mxu1 %vm2168_vm0, %v2961_v2 }
 0x4ac   : > { %v685_v6 = vpop.f32.mrb[4].mxu0 }
 0x4ad   : > { %v1656_v3 = vpop.f32.mrb[5].mxu0 }
 0x4b4   : > { %v852_v59 = vpop.f32.mrb[6].mxu0 }
 0x4b5   : > { %v853_v51 = vadd.f32 %v2471_v27, %v852_v59  ;;  %v1678_v56 = vpop.f32.mrb[7].mxu0 }
 0x4b7   : > { %v863_v49 = vrot.slane %v853_v51, %v780_v0 }
 0x4b9   : > { %v920_v57 = vrot.slane %v863_v49, %v780_v0  ;;  %v864_v54 = vcombine.high %v863_v49, %v863_v49 }
 0x4bb   : > { %928 = vrot.lane.b32.xlu0 %v920_v57, %s2172_s25  ;;  %v927_v53 = vrot.slane %v864_v54, %v780_v0  ;;  %v870_v0 = vunpack.c.0.s8 %v869_v4 }
 0x4bd   : > { %930 = vrot.lane.b32.xlu1 %v927_v53, %s2172_s25  ;;  %v873_v57 = vsub.s32 %v870_v0, %v2563_v50 }
 0x51f   : > { %v585_v58 = vpop.f32.mrb[2].mxu1 }
 0x520   : > { %591 = vst.msk [vmem:[%s589_s14] sm:$0x3] %vm590_vm5, %v585_v58  ;;  %v2687_v60 = vmax.f32 %v2135_v44, %v585_v58   ;;  %v1645_v2 = vpop.f32.mrb[3].mxu1 }
 0x522   : > { %v593_v61 = vsub.f32 %v2135_v44, %v2687_v60  ;;  %v596_v5 = vsub.f32 %v585_v58, %v2687_v60 }
 0x524   : > { %v594_v3 = vmul.f32 1.442695, %v593_v61  ;;  %v597_v59 = vmul.f32 1.442695, %v596_v5 }
 0x526   : > { %1851 = vpow2.f32 %v594_v3 }
 0x527   : > { %v755_v51 = vpop.f32.mrb[4].mxu1  ;;  %1853 = vpow2.f32 %v597_v59 }
 0x528   : > { %v756_v56 = vadd.f32 %v755_v51, %v685_v6  ;;  %v1667_v53 = vpop.f32.mrb[5].mxu1 }
 0x52a   : > { %v765_v7 = vadd.f32 %v2466_v26, %v756_v56 }
 0x52c   : > { %v874_v2 = vrot.slane %v765_v7, %v873_v57 }
 0x52e   : > { %v875_v8 = vcombine.high %v874_v2, %v874_v2  ;;  %v882_v63 = vrot.slane %v874_v2, %v873_v57 }
 0x52f   : > { %v931_v2 = vpop.permute.xlu1 %930 }
 0x530   : > { %v2694_v9 = vpop.eup %1851  ;;  %v889_v44 = vrot.slane %v875_v8, %v873_v57  ;;  %v893_v58 = vrot.slane %v882_v63, %v2570_v52  ;;  %v929_v57 = vpop.permute.xlu0 %928 }
 0x531   : > { %v599_v4 = vmul.f32 %v2131_v43, %v2694_v9  ;;  %v2699_v61 = vpop.eup %1853 }
 0x532   : > { %v897_v6 = vrot.slane %v889_v44, %v2570_v52  ;;  %v900_v5 = vadd.f32 %v893_v58, %v863_v49 }
 0x533   : > { %v2703_v43 = vadd.f32 %v2699_v61, %v599_v4  }
 0x534   : > { %v901_v3 = vadd.f32 %v897_v6, %v864_v54  ;;  %v1550_v7 = vmul.f32 -1.442695, %v900_v5 }
 0x536   : > { %1855 = vpow2.f32 %v1550_v7  ;;  %v1551_v59 = vmul.f32 -1.442695, %v901_v3  ;;  %v204_v7 = vld [vmem:[%s203_s29] sm:$0x3] }
 0x538   : > { %1857 = vpow2.f32 %v1551_v59 }
 0x540   : > { %v1856_v0 = vpop.eup %1855 }
 0x541   : > { %v908_v8 = vadd.f32 1.0, %v1856_v0  ;;  %v967_v0 = vrot.slane %v204_v7, %v2570_v52  ;;  %v1753_v52 = vpack.c.bf16 %v2487_v35, %v2485_v34 }
 0x542   : > { %v1858_v51 = vpop.eup %1857 }
 0x543   : > { %v909_v56 = vadd.f32 1.0, %v1858_v51  ;;  %1859 = vrcp.f32 %v908_v8  ;;  %v2964_v51 = vsub.s32 1, %v2563_v50 }
 0x545   : > { %1861 = vrcp.f32 %v909_v56  ;;  %v1744_v56 = vpack.c.bf16 %v2475_v29, %v2473_v28 }
 0x547   : > { %1745 = vmatpush3.bf16.msra.mxu1 %v1744_v56 }
 0x548   : > { %1746 = vmatprep.subr.bf16.mxu1 %v2962_v1 }
 0x54d   : > { %v1860_v53 = vpop.eup %1859 }
 0x54e   : > { %v934_v63 = vmul.f32 %v1860_v53, %v929_v57  ;;  %v1747_v57 = vpack.c.bf16 %v2479_v31, %v2477_v30 }
 0x54f   : > { %v1862_v49 = vpop.eup %1861 }
 0x550   : > { %v935_v44 = vmul.f32 %v1862_v49, %v931_v2  ;;  %938 = vrot.lane.b32.xlu0 %v934_v63, %s2172_s25  ;;  %1748 = vmatpush3.bf16.msra.mxu1 %v1747_v57  ;;  %v948_v2 = vsub.f32 1.0, %v1860_v53 }
 0x552   : > { %940 = vrot.lane.b32.xlu1 %v935_v44, %s2172_s25  ;;  %v960_v44 = vmul.f32 %v2147_v47, %v1860_v53 }
 0x5c2   : > { %v939_v54 = vpop.permute.xlu0 %938 }
 0x5c3   : > { %v944_v4 = vadd.f32 %v939_v54, %v893_v58  ;;  %v974_v58 = vrot.slane %v204_v7, %v2964_v51  ;;  %v961_v7 = vmul.f32 %v2143_v46, %v1862_v49 }
 0x5c4   : > { %v941_v5 = vpop.permute.xlu1 %940 }
 0x5c5   : > { %1863 = vtanh.f32 %v944_v4  ;;  %v945_v3 = vadd.f32 %v941_v5, %v897_v6  ;;  %v1750_v6 = vpack.c.bf16 %v2483_v33, %v2481_v32  ;;  %v949_v4 = vsub.f32 1.0, %v1862_v49 }
 0x5c7   : > { %1865 = vtanh.f32 %v945_v3  ;;  %1751 = vmatpush3.bf16.msra.mxu0 %v1750_v6 }
 0x5c8   : > { %1752 = vmatprep.subr.bf16.mxu0 %v2962_v1 }
 0x5cb   : > { %1754 = vmatpush3.bf16.msra.mxu0 %v1753_v52 }
 0x5cf   : > { %v1864_v59 = vpop.eup %1863 }
 0x5d0   : > { %952 = vrot.lane.b32.xlu0 %v1864_v59, %s2170_s24 }
 0x5d1   : > { %v1866_v8 = vpop.eup %1865 }
 0x5d2   : > { %954 = vrot.lane.b32.xlu1 %v1866_v8, %s2170_s24 }
 0x5d4   : > { %969 = vbcast.lane.b32.xlu0 %v967_v0, 256 }
 0x5d6   : > { %976 = vbcast.lane.b32.xlu1 %v974_v58, 256 }
 0x5d8   : > { %1092 = vrot.lane.b32.xlu0 %v2139_v45, %s2170_s24 }
 0x642   : > { %v953_v63 = vpop.permute.xlu0 %952 }
 0x643   : > { %v958_v54 = vmul.f32 %v953_v63, %v948_v2 }
 0x644   : > { %v955_v5 = vpop.permute.xlu1 %954 }
 0x645   : > { %v962_v3 = vadd.f32 %v960_v44, %v958_v54  ;;  %v959_v59 = vmul.f32 %v955_v5, %v949_v4 }
 0x646   : > { %v970_v0 = vpop.permute.xlu0 %969 }
 0x647   : > { %v963_v8 = vadd.f32 %v961_v7, %v959_v59  ;;  %v978_v51 = vsub.f32 1.0, %v970_v0  ;;  %v982_v1 = vmul.f32 %v970_v0, %v962_v3 }
 0x648   : > { %v977_v58 = vpop.permute.xlu1 %976 }
 0x649   : > { %v980_v6 = vmul.f32 %v2147_v47, %v978_v51  ;;  %v979_v56 = vsub.f32 1.0, %v977_v58  ;;  %v983_v57 = vmul.f32 %v977_v58, %v963_v8 }
 0x64a   : > { %v1093_v52 = vpop.permute.xlu0 %1092 }
 0x64b   : > { %v2731_v47 = vadd.f32 %v982_v1, %v980_v6   ;;  %v981_v53 = vmul.f32 %v2143_v46, %v979_v56  ;;  %1699 = vmatmul.mubr.msk.f32.vlgmr.msra.gmra.mrb[8].mxu0 %vm244_vm2, %v1093_v52 }
 0x64d   : > { %v986_v49 = vmul.f32 %v2731_v47, %v2594_v62  ;;  %v2737_v46 = vadd.f32 %v983_v57, %v981_v53  }
 0x64f   : > { %v988_v2 = vsel %vm223_vm1, %v986_v49, 0.0  ;;  %v987_v63 = vmul.f32 %v2737_v46, %v2599_v55 }
 0x650   : > { %v989_v44 = vrot.slane %v988_v2, 4 }
 0x651   : > { %v995_v54 = vsel %vm223_vm1, %v987_v63, 0.0 }
 0x652   : > { %v990_v4 = vadd.f32 %v989_v44, %v988_v2  ;;  %v996_v5 = vrot.slane %v995_v54, 4 }
 0x654   : > { %v997_v3 = vadd.f32 %v996_v5, %v995_v54  ;;  %v991_v7 = vrot.slane %v990_v4, 2 }
 0x656   : > { %v992_v59 = vadd.f32 %v991_v7, %v990_v4  ;;  %v998_v0 = vrot.slane %v997_v3, 2 }
 0x658   : > { %v993_v8 = vrot.slane %v992_v59, 1  ;;  %v999_v51 = vadd.f32 %v998_v0, %v997_v3 }
 0x65a   : > { %v1000_v58 = vrot.slane %v999_v51, 1  ;;  %v994_v62 = vadd.f32 %v993_v8, %v992_v59 }
 0x65c   : > { %v1001_v6 = vadd.f32 %v1000_v58, %v999_v51 }
 0x65e   : > { %v1010_v1 = vsel %vm240_vm3, %v1001_v6, %v994_v62 }
 0x65f   : > { %1011 = vrot.lane.b32.xlu1 %v1010_v1, %s2170_s24 }
 0x6d1   : > { %v1012_v56 = vpop.permute.xlu1 %1011 }
 0x6d2   : > { %1688 = vmatmul.mubr.msk.f32.vlgmr.msra.gmra.mrb[6].mxu1 %vm244_vm2, %v1012_v56 }
 0x71e   : > { %v1162_v55 = vpop.f32.mrb[8].mxu0 }
 0x71f   : > { %v1163_v52 = vadd.f32 %v2497_v37, %v1162_v55  ;;  %v1700_v53 = vpop.f32.mrb[9].mxu0 }
 0x720   :  { %v1199_v53 = vld [vmem:[#allocation2] sm:$0x3] (%p189_p6) }
 0x721   : > { %1174 = vrot.lane.b32.xlu0 %v1163_v52, %s2172_s25 }
 0x793   : > { %v1175_v5 = vpop.permute.xlu0 %1174 }
 0x7a5   : > { %v1081_v57 = vpop.f32.mrb[6].mxu1 }
 0x7a6   : > { %v1082_v49 = vadd.f32 %v2492_v36, %v1081_v57  ;;  %v1689_v2 = vpop.f32.mrb[7].mxu1  ;;  %v2175_v57 = vmov (%p189_p6), 0  }
 0x7a7   :  { %v1204_v2 = vld [vmem:[#allocation2 + $0xa] sm:$0x3] (%p189_p6) }
 0x7a8   : > { %v1166_v63 = vadd.f32 %v1163_v52, %v1082_v49 }
 0x7aa   : > { %v1556_v44 = vmul.f32 -1.442695, %v1166_v63  ;;  %v1203_v63 = vld [vmem:[#allocation2 + $0x8] sm:$0x3] (%p189_p6) }
 0x7ac   : > { %1867 = vpow2.f32 %v1556_v44  ;;  %v2965_v44 = vmov %v2687_v60  ;;  %v1202_v60 = vld [vmem:[#allocation2 + $0x6] sm:$0x3] (%p189_p6) }
 0x7b6   : > { %v1868_v54 = vpop.eup %1867 }
 0x7b7   : > { %v1170_v4 = vadd.f32 1.0, %v1868_v54  ;;  %v1206_v54 = vld [vmem:[#allocation2 + $0xe] sm:$0x3] (%p189_p6) }
 0x7b9   : > { %1869 = vrcp.f32 %v1170_v4  ;;  %v2966_v4 = vlaneseq (%p189_p6) }
 0x7bb   :  { %v2781_v10 = vand.u32 (%p189_p6), 127, %v2966_v4 }
 0x7bd   :  { %v1243_v13 = vsub.s32 (%p189_p6), %v2781_v10, %v2563_v50  ;;  %vm1322_vm13 = vcmp.lt.s32.totalorder (%p189_p6), %v2781_v10, 2  ;;  %vm1321_vm14 = vcmp.lt.s32.totalorder (%p189_p6), %v2781_v10, 1  ;;  %vm1323_vm0 = vcmp.lt.s32.totalorder (%p189_p6), %v2781_v10, 3 }
 0x7be   :  { %vm1324_vm1 = vcmp.lt.s32.totalorder (%p189_p6), %v2781_v10, 4  ;;  %vm1325_vm2 = vcmp.lt.s32.totalorder (%p189_p6), %v2781_v10, 5  ;;  %vm1327_vm4 = vcmp.lt.s32.totalorder (%p189_p6), %v2781_v10, 7 }
 0x7c3   : > { %v1870_v3 = vpop.eup %1869 }
 0x7c4   : > { %v1177_v7 = vmul.f32 %v1870_v3, %v1175_v5  ;;  %v1184_v51 = vsub.f32 1.0, %v1870_v3  ;;  %v1190_v62 = vmul.f32 %v2139_v45, %v1870_v3  ;;  %v2176_v3 = vmov (%p189_p6), 0.0  }
 0x7c6   : > { %1179 = vrot.lane.b32.xlu1 %v1177_v7, %s2172_s25 }
 0x7ca   : > { %603 = vperm.xlu1 %1842, %v2694_v9  }
 0x7ce   :  { %1874 = vset.pattern.permute.xlu1 (%p189_p6), %v2175_v57 }
 0x838   : > { %v1180_v59 = vpop.permute.xlu1 %1179 }
 0x839   : > { %v1182_v0 = vadd.f32 %v1180_v59, %v1082_v49  ;;  %v1200_v49 = vld [vmem:[#allocation2 + $0x2] sm:$0x3] (%p189_p6) }
 0x83b   : > { %1871 = vtanh.f32 %v1182_v0 }
 0x845   : > { %v1872_v8 = vpop.eup %1871 }
 0x846   : > { %1186 = vrot.lane.b32.xlu0 %v1872_v8, %s2170_s24 }
 0x849   : > { %v604_v1 = vpop.permute.xlu1 %603 }
 0x84a   : > { %609 = vperm.xlu0 %1841, %v2699_v61   ;;  %v606_v9 = vmul.f32 %v2127_v42, %v604_v1  ;;  %v1201_v61 = vld [vmem:[#allocation2 + $0x4] sm:$0x3] (%p189_p6) }
 0x84e   :  { %1873 = vset.pattern.permute.xlu0 (%p189_p6), %v2175_v57 }
 0x84f   :  { %1216 = vperm.xlu0 (%p189_p6), %1873, %v1199_v53  }
 0x853   :  { %1219 = vperm.xlu0 (%p189_p6), %1873, %v1200_v49  }
 0x857   :  { %1228 = vperm.xlu0 (%p189_p6), %1873, %v1203_v63  }
 0x8b8   : > { %v1187_v58 = vpop.permute.xlu0 %1186 }
 0x8b9   : > { %v1189_v6 = vmul.f32 %v1187_v58, %v1184_v51 }
 0x8bb   : > { %v1191_v45 = vadd.f32 %v1190_v62, %v1189_v6  }
 0x8bd   : > { %1193 = vrot.lane.b32.xlu1 %v1191_v45, %s2170_s24 }
 0x8c1   :  { %1222 = vperm.xlu1 (%p189_p6), %1874, %v1201_v61  }
 0x8c5   :  { %1225 = vperm.xlu1 (%p189_p6), %1874, %v1202_v60  }
 0x8c9   : > { %v610_v56 = vpop.permute.xlu0 %609  ;;  %1231 = vperm.xlu1 (%p189_p6), %1874, %v1204_v2  }
 0x8ca   : > { %v612_v55 = vmul.f32 %v610_v56, %v2655_v48  ;;  %v1205_v48 = vld [vmem:[#allocation2 + $0xc] sm:$0x3] (%p189_p6) }
 0x8cb   :  { %1234 = vperm.xlu0 (%p189_p6), %1873, %v1205_v48  }
 0x8cc   : > { %v613_v42 = vadd.f32 %v612_v55, %v606_v9  }
 0x8cd   :  { %1237 = vperm.xlu1 (%p189_p6), %1874, %v1206_v54  }
 0x8ce   :  { %v1217_v12 = vpop.permute.xlu0 (%p189_p6), %1216 }
 0x8cf   :  { %v1244_v16 = vrot.slane (%p189_p6), %v1217_v12, %v1243_v13 }
 0x8d2   :  { %v1220_v15 = vpop.permute.xlu0 (%p189_p6), %1219 }
 0x8d3   :  { %v1248_v17 = vrot.slane (%p189_p6), %v1220_v15, %v1243_v13 }
 0x8d5   :  { %v1274_v20 = vsel (%p189_p6), %vm240_vm3, %v1248_v17, %v1244_v16  ;;  %vm1326_vm3 = vcmp.lt.s32.totalorder (%p189_p6), %v2781_v10, 6 }
 0x8d6   :  { %v1229_v23 = vpop.permute.xlu0 (%p189_p6), %1228 }
 0x8d7   :  { %v1260_v25 = vrot.slane (%p189_p6), %v1229_v23, %v1243_v13 }
 0x92a   :  { %191 = sbr.rel (!%p189_p6) target bundleno = 139 (0x8b), region = 136 }
 0x92f   : > { %v1194_v52 = vpop.permute.xlu1 %1193 }
 0x930   : > { %1198 = vst.msk [vmem:[%s1196_s8] sm:$0x3] %vm1197_vm6, %v1194_v52 }
 0x940   :  { %v1223_v11 = vpop.permute.xlu1 %1222 }
 0x941   :  { %v1252_v18 = vrot.slane %v1223_v11, %v1243_v13 }
 0x943   :  { %v1276_v21 = vsel %vm1275_vm7, %v1252_v18, %v1274_v20 }
 0x944   :  { %v1226_v14 = vpop.permute.xlu1 %1225 }
 0x945   :  { %v1256_v19 = vrot.slane %v1226_v14, %v1243_v13 }
 0x947   :  { %v1278_v24 = vsel %vm1277_vm8, %v1256_v19, %v1276_v21 }
 0x948   :  { %v1232_v22 = vpop.permute.xlu1 %1231  ;;  %v1280_v27 = vsel %vm1279_vm9, %v1260_v25, %v1278_v24 }
 0x949   :  { %v1264_v26 = vrot.slane %v1232_v22, %v1243_v13 }
 0x94a   :  { %v1235_v29 = vpop.permute.xlu0 %1234 }
 0x94b   :  { %v1268_v31 = vrot.slane %v1235_v29, %v1243_v13  ;;  %v1282_v32 = vsel %vm1281_vm10, %v1264_v26, %v1280_v27 }
 0x94c   :  { %v1238_v28 = vpop.permute.xlu1 %1237 }
 0x94d   :  { %v1272_v30 = vrot.slane %v1238_v28, %v1243_v13  ;;  %v1284_v33 = vsel %vm1283_vm11, %v1268_v31, %v1282_v32 }
 0x94f   :  { %v1286_v34 = vsel %vm1285_vm12, %v1272_v30, %v1284_v33 }
 0x950   :  { %1288 = vxpose.xlu0.b32.start.end [1/1] (short) (narrow) %v1286_v34, 8 }
 0x9d0   :  { %v1304_v35 = vpop.trf.xlu0 }
 0x9d1   :  { %v1330_v36 = vsel %vm1322_vm13, %v1304_v35, -1e+30  ;;  %v1329_v37 = vsel %vm1321_vm14, %v1304_v35, -1e+30  ;;  %v1331_v40 = vsel %vm1323_vm0, %v1304_v35, -1e+30 }
 0x9d2   :  { %v1343_v38 = vsel %vm1336_vm15, %v1330_v36, -inf  ;;  %v1340_v39 = vsel %vm1336_vm15, %v1329_v37, -inf  ;;  %v1346_v41 = vsel %vm1336_vm15, %v1331_v40, -inf  ;;  %v1332_v42 = vsel %vm1324_vm1, %v1304_v35, -1e+30 }
 0x9d3   :  { %1344 = vmax.xlane.f32.xlu0 %v1343_v38  ;;  %1341 = vmax.xlane.f32.xlu1 %v1340_v39  ;;  %v1349_v43 = vsel %vm1336_vm15, %v1332_v42, -inf  ;;  %v1333_v45 = vsel %vm1325_vm2, %v1304_v35, -1e+30  ;;  %v1334_v47 = vsel %vm1326_vm3, %v1304_v35, -1e+30 }
 0x9d4   :  { %v1352_v46 = vsel %vm1336_vm15, %v1333_v45, -inf  ;;  %v1355_v50 = vsel %vm1336_vm15, %v1334_v47, -inf  ;;  %v1335_v44 = vsel %vm1327_vm4, %v1304_v35, -1e+30 }
 0x9d5   :  { %v1358_v5 = vsel %vm1336_vm15, %v1335_v44, -inf }
 0x9d7   :  { %1347 = vmax.xlane.f32.xlu1 %v1346_v41 }
 0x9db   :  { %1350 = vmax.xlane.f32.xlu1 %v1349_v43 }
 0x9df   :  { %1353 = vmax.xlane.f32.xlu1 %v1352_v46 }
 0x9e3   :  { %1356 = vmax.xlane.f32.xlu1 %v1355_v50 }
 0x9e7   :  { %1359 = vmax.xlane.f32.xlu1 %v1358_v5 }
 0x9eb   :  { %1394 = vadd.xlane.f32.xlu1 %v2176_v3 }
 0xa60   :  { %v1345_v7 = vpop.xlane.xlu0 %1344  ;;  %v1342_v59 = vpop.xlane.xlu1 %1341 }
 0xa61   :  { %v1363_v0 = vsub.f32 %v1330_v36, %v1345_v7  ;;  %v1362_v8 = vsub.f32 %v1329_v37, %v1342_v59 }
 0xa63   :  { %v1373_v51 = vmul.f32 1.442695, %v1363_v0  ;;  %v1371_v58 = vmul.f32 1.442695, %v1362_v8 }
 0xa64   :  { %v1348_v62 = vpop.xlane.xlu1 %1347 }
 0xa65   :  { %1875 = vpow2.f32 %v1373_v51  ;;  %v1364_v6 = vsub.f32 %v1331_v40, %v1348_v62 }
 0xa66   :  { %1877 = vpow2.f32 %v1371_v58 }
 0xa67   :  { %v1375_v1 = vmul.f32 1.442695, %v1364_v6 }
 0xa68   :  { %v1351_v56 = vpop.xlane.xlu1 %1350 }
 0xa69   :  { %v1365_v9 = vsub.f32 %v1332_v42, %v1351_v56  ;;  %1879 = vpow2.f32 %v1375_v1 }
 0xa6b   :  { %v1377_v55 = vmul.f32 1.442695, %v1365_v9 }
 0xa6c   :  { %v1354_v52 = vpop.xlane.xlu1 %1353 }
 0xa6d   :  { %v1366_v61 = vsub.f32 %v1333_v45, %v1354_v52  ;;  %1881 = vpow2.f32 %v1377_v55 }
 0xa6f   :  { %v1876_v53 = vpop.eup %1875  ;;  %v1379_v57 = vmul.f32 1.442695, %v1366_v61 }
 0xa70   :  { %v1878_v60 = vpop.eup %1877  ;;  %v1357_v49 = vpop.xlane.xlu1 %1356  ;;  %v2822_v4 = vsel %vm1322_vm13, %v1876_v53, 0.0 }
 0xa71   :  { %1883 = vpow2.f32 %v1379_v57  ;;  %v1367_v2 = vsub.f32 %v1334_v47, %v1357_v49  ;;  %v2816_v63 = vsel %vm1321_vm14, %v1878_v60, 0.0  ;;  %v1399_v14 = vsel %vm1336_vm15, %v2822_v4, 0.0 }
 0xa72   :  { %v1396_v54 = vsel %vm1336_vm15, %v2816_v63, 0.0 }
 0xa73   :  { %v1381_v48 = vmul.f32 1.442695, %v1367_v2  ;;  %1397 = vadd.xlane.f32.xlu1 %v1396_v54  ;;  %v1880_v11 = vpop.eup %1879 }
 0xa74   :  { %v1360_v12 = vpop.xlane.xlu1 %1359  ;;  %v2828_v16 = vsel %vm1323_vm0, %v1880_v11, 0.0 }
 0xa75   :  { %1885 = vpow2.f32 %v1381_v48  ;;  %v1368_v13 = vsub.f32 %v1335_v44, %v1360_v12  ;;  %v1402_v19 = vsel %vm1336_vm15, %v2828_v16, 0.0 }
 0xa77   :  { %v1383_v15 = vmul.f32 1.442695, %v1368_v13  ;;  %1400 = vadd.xlane.f32.xlu1 %v1399_v14  ;;  %v1882_v17 = vpop.eup %1881 }
 0xa78   :  { %v1395_v18 = vpop.xlane.xlu1 %1394  ;;  %v2834_v21 = vsel %vm1324_vm1, %v1882_v17, 0.0 }
 0xa79   :  { %1887 = vpow2.f32 %v1383_v15  ;;  %v1405_v24 = vsel %vm1336_vm15, %v2834_v21, 0.0  ;;  %vm1417_vm5 = vcmp.gt.f32.partialorder %v1395_v18, 0.0 }
 0xa7a   :  { %1889 = vrcp.f32 %v1395_v18 }
 0xa7b   :  { %v1884_v20 = vpop.eup %1883  ;;  %1403 = vadd.xlane.f32.xlu1 %v1402_v19 }
 0xa7c   :  { %v2838_v22 = vsel %vm1325_vm2, %v1884_v20, 0.0 }
 0xa7d   :  { %v1408_v23 = vsel %vm1336_vm15, %v2838_v22, 0.0 }
 0xa7e   :  { %1409 = vadd.xlane.f32.xlu0 %v1408_v23 }
 0xa7f   :  { %v1886_v25 = vpop.eup %1885  ;;  %1406 = vadd.xlane.f32.xlu1 %v1405_v24 }
 0xa80   :  { %v2846_v26 = vsel %vm1326_vm3, %v1886_v25, 0.0 }
 0xa81   :  { %v1411_v27 = vsel %vm1336_vm15, %v2846_v26, 0.0 }
 0xa83   :  { %v1888_v28 = vpop.eup %1887  ;;  %1412 = vadd.xlane.f32.xlu1 %v1411_v27 }
 0xa84   :  { %v1890_v29 = vpop.eup %1889  ;;  %v2852_v30 = vsel %vm1327_vm4, %v1888_v28, 0.0 }
 0xa85   :  { %v1414_v31 = vsel %vm1336_vm15, %v2852_v30, 0.0  ;;  %v1441_v32 = vsel %vm1417_vm5, %v1890_v29, 0.0 }
 0xa86   :  { %1415 = vadd.xlane.f32.xlu0 %v1414_v31  ;;  %v1449_v33 = vmul.f32 0.0, %v1441_v32 }
 0xa88   :  { %1457 = vst.msk [vmem:[#allocation15] sm:$0x3] %vm1336_vm15, %v1449_v33 }
 0xa89   :  { %2048 = shalt.err (!%p2045_p11)
}
 0xa8a   :  { %s2049_s3 = scalar_lea.hbm %s2919_s18, 256 }
 0xa8b   :  { %p2050_p12 = scmp.ne.s32.totalorder %s2919_s18, %s2049_s3  ;;  %p2053_p13 = scmp.lt.u32.totalorder %s2049_s3, %s2919_s18 }
 0xa8d   :  { %p2055_p0 = pnand %p2053_p13, %p2050_p12 }
 0xa8f   :  { %2058 = shalt.err (!%p2055_p0)
}
 0xa90   :  { %1476 = dma.vmem_to_hbm [thread:$0]  %s1471_s11, 256, %s2919_s18, [#allocation5], %s2162_s10, %s2162_s10, %s2163_s0  }
 0xa91   :  { %s2178_s18 = smov [#allocation15]  }
 0xa92   :  { %s1482_s19 = sshll.u32 %s2178_s18, 4  ;;  %s1483_s19 = int_to_ptr.vmem [resolvable:$true] %s1482_s19 }
 0xa93   :  { %s2059_s16 = scalar_lea.vmem %s1483_s19, 256  ;;  %p2064_p2 = scmp.lt.s32.totalorder %s1483_s19, %s1483_s19 }
 0xa94   :  { %p2060_p1 = scmp.ne.s32.totalorder %s1483_s19, %s2059_s16  ;;  %p2065_p3 = scmp.lt.s32.totalorder %s2059_s16, %s2059_s16 }
 0xa96   :  { %p2066_p4 = por %p2065_p3, %p2064_p2 }
 0xa98   :  { %p2067_p5 = pnand %p2066_p4, %p2060_p1 }
 0xb00   :  { %v1398_v10 = vpop.xlane.xlu1 %1397 }
 0xb01   :  { %1891 = vrcp.f32 %v1398_v10  ;;  %vm1418_vm6 = vcmp.gt.f32.partialorder %v1398_v10, 0.0 }
 0xb04   :  { %v1401_v34 = vpop.xlane.xlu1 %1400 }
 0xb05   :  { %1893 = vrcp.f32 %v1401_v34  ;;  %vm1419_vm7 = vcmp.gt.f32.partialorder %v1401_v34, 0.0 }
 0xb08   :  { %v1404_v35 = vpop.xlane.xlu1 %1403 }
 0xb09   :  { %1895 = vrcp.f32 %v1404_v35  ;;  %vm1420_vm8 = vcmp.gt.f32.partialorder %v1404_v35, 0.0 }
 0xb0b   :  { %v1892_v36 = vpop.eup %1891  ;;  %v1410_v37 = vpop.xlane.xlu0 %1409 }
 0xb0c   :  { %v1442_v38 = vsel %vm1418_vm6, %v1892_v36, 0.0  ;;  %1897 = vrcp.f32 %v1410_v37  ;;  %v1407_v39 = vpop.xlane.xlu1 %1406  ;;  %vm1422_vm9 = vcmp.gt.f32.partialorder %v1410_v37, 0.0 }
 0xb0d   :  { %v1450_v40 = vmul.f32 %v1442_v38, %v2816_v63  ;;  %1899 = vrcp.f32 %v1407_v39  ;;  %vm1421_vm10 = vcmp.gt.f32.partialorder %v1407_v39, 0.0 }
 0xb0f   :  { %v1894_v41 = vpop.eup %1893  ;;  %1458 = vst.msk [vmem:[#allocation15 + $0x2] sm:$0x3] %vm1336_vm15, %v1450_v40 }
 0xb10   :  { %v1443_v42 = vsel %vm1419_vm7, %v1894_v41, 0.0  ;;  %v1413_v43 = vpop.xlane.xlu1 %1412 }
 0xb11   :  { %v1451_v45 = vmul.f32 %v1443_v42, %v2822_v4  ;;  %1901 = vrcp.f32 %v1413_v43  ;;  %vm1423_vm11 = vcmp.gt.f32.partialorder %v1413_v43, 0.0 }
 0xb13   :  { %v1896_v46 = vpop.eup %1895  ;;  %1459 = vst.msk [vmem:[#allocation15 + $0x4] sm:$0x3] %vm1336_vm15, %v1451_v45  ;;  %v1416_v47 = vpop.xlane.xlu0 %1415 }
 0xb14   :  { %v1444_v50 = vsel %vm1420_vm8, %v1896_v46, 0.0  ;;  %1903 = vrcp.f32 %v1416_v47  ;;  %vm1424_vm12 = vcmp.gt.f32.partialorder %v1416_v47, 0.0 }
 0xb15   :  { %v1452_v44 = vmul.f32 %v1444_v50, %v2828_v16 }
 0xb16   :  { %v1898_v5 = vpop.eup %1897 }
 0xb17   :  { %v1900_v3 = vpop.eup %1899  ;;  %1460 = vst.msk [vmem:[#allocation15 + $0x6] sm:$0x3] %vm1336_vm15, %v1452_v44  ;;  %v1446_v7 = vsel %vm1422_vm9, %v1898_v5, 0.0 }
 0xb18   :  { %v1454_v59 = vmul.f32 %v1446_v7, %v2838_v22  ;;  %v1445_v0 = vsel %vm1421_vm10, %v1900_v3, 0.0 }
 0xb19   :  { %v1453_v8 = vmul.f32 %v1445_v0, %v2834_v21 }
 0xb1a   :  { %1462 = vst.msk [vmem:[#allocation15 + $0xa] sm:$0x3] %vm1336_vm15, %v1454_v59 }
 0xb1b   :  { %v1902_v51 = vpop.eup %1901  ;;  %1461 = vst.msk [vmem:[#allocation15 + $0x8] sm:$0x3] %vm1336_vm15, %v1453_v8 }
 0xb1c   :  { %v1447_v58 = vsel %vm1423_vm11, %v1902_v51, 0.0 }
 0xb1d   :  { %v1455_v62 = vmul.f32 %v1447_v58, %v2846_v26 }
 0xb1e   :  { %v1904_v6 = vpop.eup %1903 }
 0xb1f   :  { %1463 = vst.msk [vmem:[#allocation15 + $0xc] sm:$0x3] %vm1336_vm15, %v1455_v62  ;;  %v1448_v1 = vsel %vm1424_vm12, %v1904_v6, 0.0 }
 0xb20   :  { %v1456_v56 = vmul.f32 %v1448_v1, %v2852_v30 }
 0xb22   :  { %1464 = vst.msk [vmem:[#allocation15 + $0xe] sm:$0x3] %vm1336_vm15, %v1456_v56 }
 0xb23   :  { %2070 = shalt.err (!%p2067_p5)
}
 0xb24   :  { %s2967_s23 = sld [smem:[#allocation37_spill]] }
 0xb2a   :  { %s2071_s4 = scalar_lea.hbm %s2967_s23, 256 }
 0xb2b   :  { %p2072_p6 = scmp.ne.s32.totalorder %s2967_s23, %s2071_s4  ;;  %p2075_p7 = scmp.lt.u32.totalorder %s2071_s4, %s2967_s23 }
 0xb2d   :  { %p2077_p8 = pnand %p2075_p7, %p2072_p6 }
 0xb2f   :  { %2080 = shalt.err (!%p2077_p8)
}
 0xb30   :  { %1488 = dma.vmem_to_hbm [thread:$0]  %s1483_s19, 256, %s2967_s23, [#allocation16], %s2162_s10, %s2162_s10, %s2163_s0  }
 0xb31   :  { %2121 = dma.done.wait [#allocation5], 256  }
 0xb32   :  { %2122 = vsyncadd [#allocation5], 4294967040 }
 0xb33   :  { %2123 = dma.done.wait [#allocation16], 256  }
 0xb34   :  { %2124 = vsyncadd [#allocation16], 4294967040 }
 0xb35   :  { %1495 = vsyncpa [#allocation4], 1 }
 0xb36   :  { %1496 = vsyncpa [#allocation7], 1 }
 0xb37   :  { %1497 = vsyncpa [#allocation10], 1 }
 0xb38   :  { %1498 = vsyncpa [#allocation13], 1 }
 0xb39   :  { %1499 = vsyncpa [#allocation5], 1 }
 0xb3a   :  { %1500 = vsyncpa [#allocation16], 1 }

</bundles_post_ra>
